<compile_context>
chip_gen: v7x
topology: tpu7x:2x2x1
jax: 0.10.0
libtpu: 0.0.40
codegen_flags: <defaults>
</compile_context>

<pallas_src>
import math

import jax
import jax.numpy as jnp
from jax.experimental import pallas as pl
from jax.experimental.pallas import tpu as pltpu


def _round_up(x, m):
    return ((x + m - 1) // m) * m


def _gru_kernel(emb_ref, lens_ref, wi_ref, wh_ref, bi_ref, bhn_ref,
                out_ref, hid_ref, xi_scr, h_scr):
    g = pl.program_id(1)                       # time-block index (serial axis)
    bb, hp = h_scr.shape                       # batch tile, padded per-gate hidden
    tt = out_ref.shape[0] // bb                # timesteps handled per grid step

    @pl.when(g == 0)
    def _():
        # initialize_hidden_state -> zeros (per batch tile)
        h_scr[...] = jnp.zeros_like(h_scr)

    # Hoisted input projection: one lane-dense (TT*Bb, Ep) x (Ep, 3Hp) MXU
    # matmul covers every timestep of this block; it does not depend on h so
    # it stays off the serial critical path. Staged in VMEM scratch.
    xi_scr[...] = jnp.dot(emb_ref[...], wi_ref[...],
                          preferred_element_type=jnp.float32) + bi_ref[...]

    lens = lens_ref[...]                       # (Bb, 1) int32
    w_h = wh_ref[...]                          # (Hp, 3Hp) bf16
    b_hn = bhn_ref[...]                        # (1, Hp)  f32  (only the n-gate hidden bias)

    # TODO(synk): at production Bp, interleave 2-4 independent batch sub-tiles
    # per timestep and/or latch W_h in the MXU via matmul_push_rhs/acc_lhs/pop
    # to keep the MXU+EUP pipelines busy on the latency-bound recurrence.
    h = h_scr[...]                             # (Bb, Hp) f32, carried across time blocks
    for k in range(tt):                        # static, fully unrolled
        t = g * tt + k
        # Single fused hidden projection (gate order r, z, n).
        hh = jnp.dot(h.astype(jnp.bfloat16), w_h,
                     preferred_element_type=jnp.float32)          # (Bb, 3Hp)
        xi_t = xi_scr[pl.ds(k * bb, bb), :]                       # (Bb, 3Hp)

        # PyTorch GRU equations (b_hr/b_hz already folded into xi):
        #   r = sigmoid(x W_ir + b_ir + h W_hr + b_hr)
        #   z = sigmoid(x W_iz + b_iz + h W_hz + b_hz)
        #   n = tanh   (x W_in + b_in + r * (h W_hn + b_hn))
        #   h = (1 - z) * n + z * h_prev  ==  n + z * (h_prev - n)
        r = jax.nn.sigmoid(xi_t[:, :hp] + hh[:, :hp])
        z = jax.nn.sigmoid(xi_t[:, hp:2 * hp] + hh[:, hp:2 * hp])
        n = jnp.tanh(xi_t[:, 2 * hp:] + r * (hh[:, 2 * hp:] + b_hn))
        h_new = n + z * (h - n)

        # packed-sequence semantics: only live sequences update; padded
        # timesteps are written as zeros (pad_packed_sequence behaviour).
        live = t < lens                                           # (Bb, 1) bool
        h = jnp.where(live, h_new, h)
        out_ref[pl.ds(k * bb, bb), :] = jnp.where(live, h_new, 0.0).astype(out_ref.dtype)

    h_scr[...] = h

    @pl.when(g == pl.num_programs(1) - 1)
    def _():
        # h_n[b] == hidden at step lens[b]-1 (it stopped updating afterwards).
        hid_ref[...] = h


def encoder_gru_pallas(emb, lens, params, *, block_t=None, block_b=None):
    """emb: (T, B, E) bf16/f32, lens: (B,) int. Returns (output (T,B,H) f32, hidden (1,B,H) f32)."""
    T, B, E = emb.shape
    H = params["w_hr"].shape[0]

    Bp = _round_up(B, 8)            # sublane padding
    # TODO(synk): at production H on v6e/v7x, use round_up(H, 256) so the
    # hidden contraction fills the 2x256 MXU; 128 is native on v5e.
    Hp = _round_up(H, 128)          # lane padding per gate
    Ep = _round_up(E, 128)          # lane-dense contraction dim for the xi matmul
    H3 = 3 * Hp

    # Batch tiling: leading "parallel" grid axis (v7x megacore). At toy batch
    # there is a single tile; at production, pass block_b to split the batch.
    if block_b is None:
        block_b = Bp if Bp <= 128 else 128
    Bb = block_b
    assert Bb % 8 == 0 and Bp % Bb == 0
    NB = Bp // Bb

    if block_t is None:
        # TODO(synk): re-derive TT against v7x's 64 MiB VMEM at production sizes.
        block_t = T if T <= 16 else 16
    TT = block_t
    Tp = _round_up(T, TT)
    NT = Tp // TT

    # ---- fuse & pad parameters (gate order r, z, n), bf16 for the MXU ----
    def pack_w(wr, wz, wn, rows, rows_p):
        w = jnp.zeros((rows_p, H3), jnp.float32)
        w = w.at[:rows, 0:H].set(wr)
        w = w.at[:rows, Hp:Hp + H].set(wz)
        w = w.at[:rows, 2 * Hp:2 * Hp + H].set(wn)
        return w.astype(jnp.bfloat16)

    w_i = pack_w(params["w_ir"], params["w_iz"], params["w_in"], E, Ep)
    w_h = pack_w(params["w_hr"], params["w_hz"], params["w_hn"], H, Hp)

    # Fold b_hr/b_hz into the input bias (added once in the hoisted xi matmul);
    # only b_hn stays separate because it sits inside the r*(.) term.
    b_i = jnp.zeros((1, H3), jnp.float32)
    b_i = b_i.at[:, 0:H].set((params["b_ir"] + params["b_hr"]).reshape(1, H))
    b_i = b_i.at[:, Hp:Hp + H].set((params["b_iz"] + params["b_hz"]).reshape(1, H))
    b_i = b_i.at[:, 2 * Hp:2 * Hp + H].set(params["b_in"].reshape(1, H))
    b_hn = jnp.zeros((1, Hp), jnp.float32).at[:, :H].set(params["b_hn"].reshape(1, H))

    # ---- pad activations / lengths, lay out batch tiles as a leading block axis ----
    emb_p = jnp.zeros((Tp, Bp, Ep), jnp.bfloat16).at[:T, :B, :E].set(emb.astype(jnp.bfloat16))
    # (NB, Tp*Bb, Ep): rows within a batch tile are (t, b)-flattened so the
    # kernel sees a 2-D lane-dense slab (no in-kernel reshape needed).
    emb_blk = emb_p.reshape(Tp, NB, Bb, Ep).transpose(1, 0, 2, 3).reshape(NB, Tp * Bb, Ep)
    lens_blk = (jnp.zeros((Bp, 1), jnp.int32).at[:B, 0].set(lens.astype(jnp.int32))
                .reshape(NB, Bb, 1))

    const2d = lambda bi, g: (0, 0)

    grid_spec = pltpu.PrefetchScalarGridSpec(
        num_scalar_prefetch=0,
        grid=(NB, NT),
        in_specs=[
            pl.BlockSpec((None, TT * Bb, Ep), lambda bi, g: (bi, g, 0)),  # embedded inputs (bf16)
            pl.BlockSpec((None, Bb, 1), lambda bi, g: (bi, 0, 0)),        # lens
            # TODO(synk): the weight/bias blocks are grid-invariant; on v7x at
            # large E/H mark them pipeline_mode=pl.Buffered(1) to halve their
            # VMEM footprint against the 64 MiB budget.
            pl.BlockSpec((Ep, H3), const2d),                              # fused W_i (bf16)
            pl.BlockSpec((Hp, H3), const2d),                              # fused W_h (bf16)
            pl.BlockSpec((1, H3), const2d),                               # fused b_i (+b_hr,+b_hz)
            pl.BlockSpec((1, Hp), const2d),                               # b_hn
        ],
        out_specs=[
            pl.BlockSpec((None, TT * Bb, Hp), lambda bi, g: (bi, g, 0)),  # output, lane-dense bf16
            pl.BlockSpec((None, Bb, Hp), lambda bi, g: (bi, 0, 0)),       # final hidden (f32)
        ],
        scratch_shapes=[
            pltpu.VMEM((TT * Bb, H3), jnp.float32),   # staged xi = x@W_i + b_i
            pltpu.VMEM((Bb, Hp), jnp.float32),        # carried hidden state
        ],
    )

    # VMEM budget: double-buffered blocks + scratch, with headroom.
    def nbytes(shape, dtype):
        return math.prod(shape) * jnp.dtype(dtype).itemsize

    block_bytes = (nbytes((TT * Bb, Ep), jnp.bfloat16)
                   + nbytes((8, 128), jnp.int32)
                   + nbytes((Ep, H3), jnp.bfloat16)
                   + nbytes((Hp, H3), jnp.bfloat16)
                   + nbytes((8, H3), jnp.float32)
                   + nbytes((8, Hp), jnp.float32)
                   + nbytes((TT * Bb, Hp), jnp.bfloat16)
                   + nbytes((Bb, Hp), jnp.float32))
    scratch_bytes = nbytes((TT * Bb, H3), jnp.float32) + nbytes((Bb, Hp), jnp.float32)
    vmem_bytes = min(64 << 20, 2 * (2 * block_bytes + scratch_bytes) + (4 << 20))

    out_blk, hid_blk = pl.pallas_call(
        _gru_kernel,
        out_shape=(jax.ShapeDtypeStruct((NB, Tp * Bb, Hp), jnp.bfloat16),
                   jax.ShapeDtypeStruct((NB, Bb, Hp), jnp.float32)),
        grid_spec=grid_spec,
        compiler_params=pltpu.CompilerParams(
            # batch tiles are independent (megacore on v7x); time recurrence is serial
            dimension_semantics=("parallel", "arbitrary"),
            vmem_limit_bytes=int(vmem_bytes)),
    )(emb_blk, lens_blk, w_i, w_h, b_i, b_hn)

    out = (out_blk.reshape(NB, Tp, Bb, Hp).transpose(1, 0, 2, 3)
           .reshape(Tp, Bp, Hp)[:T, :B, :H]).astype(jnp.float32)
    hidden = hid_blk.reshape(Bp, Hp)[None, :B, :H]
    return out, hidden


def encoder_forward(tokens, lens, embedding_table, params):
    """tokens: (T, B) int32. Embedding gather is glue; the GRU runs in the Pallas kernel."""
    # bf16 gather: no f32 (T,B,E) HBM round trip.
    # TODO(synk): at production sizes fuse the gather into the kernel via
    # scalar-prefetched token ids (PrefetchScalarGridSpec + pl.Element row spec).
    emb = embedding_table.astype(jnp.bfloat16)[tokens]       # (T, B, E) bf16
    return encoder_gru_pallas(emb, lens, params)


def _reference_forward(tokens, lens, embedding_table, params):
    """Pure-JAX f32 reference for correctness checking."""
    emb = embedding_table[tokens]
    T, B, _ = emb.shape
    H = params["w_hr"].shape[0]
    h = jnp.zeros((B, H), jnp.float32)
    outs = []
    for t in range(T):
        x_t = emb[t]
        r = jax.nn.sigmoid(x_t @ params["w_ir"] + params["b_ir"]
                           + h @ params["w_hr"] + params["b_hr"])
        z = jax.nn.sigmoid(x_t @ params["w_iz"] + params["b_iz"]
                           + h @ params["w_hz"] + params["b_hz"])
        n = jnp.tanh(x_t @ params["w_in"] + params["b_in"]
                     + r * (h @ params["w_hn"] + params["b_hn"]))
        h_new = (1.0 - z) * n + z * h
        mask = (t < lens)[:, None]
        h = jnp.where(mask, h_new, h)
        outs.append(jnp.where(mask, h_new, 0.0))
    return jnp.stack(outs, axis=0), h[None]


if __name__ == "__main__":
    # Small, module-consistent shapes.
    vocab_size = 50
    embedding_dim = 32   # E
    enc_units = 32       # H
    batch_sz = 4         # B
    seq_len = 8          # T

    key = jax.random.PRNGKey(0)
    keys = jax.random.split(key, 16)
    k_scale = 1.0 / jnp.sqrt(enc_units)

    embedding_table = jax.random.normal(
        keys[0], (vocab_size, embedding_dim), jnp.float32)

    def unif(k, shape):
        return jax.random.uniform(k, shape, jnp.float32, -k_scale, k_scale)

    # nn.GRU parameters: weight_ih (3H, E), weight_hh (3H, H), biases (3H,),
    # stored here pre-transposed and split per gate (order r, z, n).
    params = dict(
        w_ir=unif(keys[1], (embedding_dim, enc_units)),
        w_iz=unif(keys[2], (embedding_dim, enc_units)),
        w_in=unif(keys[3], (embedding_dim, enc_units)),
        w_hr=unif(keys[4], (enc_units, enc_units)),
        w_hz=unif(keys[5], (enc_units, enc_units)),
        w_hn=unif(keys[6], (enc_units, enc_units)),
        b_ir=unif(keys[7], (1, enc_units)),
        b_iz=unif(keys[8], (1, enc_units)),
        b_in=unif(keys[9], (1, enc_units)),
        b_hr=unif(keys[10], (1, enc_units)),
        b_hz=unif(keys[11], (1, enc_units)),
        b_hn=unif(keys[12], (1, enc_units)),
    )

    # tokens: (T, B) int32, lens sorted descending (pack_padded_sequence default).
    tokens = jax.random.randint(keys[13], (seq_len, batch_sz), 0, vocab_size,
                                dtype=jnp.int32)
    lens = jnp.array([8, 6, 5, 3], dtype=jnp.int32)

    output, hidden = encoder_forward(tokens, lens, embedding_table, params)
    output = jax.block_until_ready(output)
    hidden = jax.block_until_ready(hidden)

    ref_out, ref_hid = _reference_forward(tokens, lens, embedding_table, params)
    assert output.shape == (seq_len, batch_sz, enc_units)
    assert hidden.shape == (1, batch_sz, enc_units)
    # bf16 weight/input/output path -> slightly looser tolerance than pure f32.
    assert jnp.allclose(output, ref_out, atol=2e-2), "output mismatch"
    assert jnp.allclose(hidden, ref_hid, atol=2e-2), "hidden mismatch"

    print("KERNEL_OK")
</pallas_src>

<mosaic_0001>
module attributes {stable_mosaic.version = 11 : i64} {
  func.func @_gru_kernel(%arg0: i32, %arg1: i32, %arg2: memref<1x64x128xbf16, #tpu.memory_space<vmem>>, %arg3: memref<1x8x1xi32, #tpu.memory_space<vmem>>, %arg4: memref<128x384xbf16, #tpu.memory_space<vmem>>, %arg5: memref<128x384xbf16, #tpu.memory_space<vmem>>, %arg6: memref<1x384xf32, #tpu.memory_space<vmem>>, %arg7: memref<1x128xf32, #tpu.memory_space<vmem>>, %arg8: memref<1x64x128xbf16, #tpu.memory_space<vmem>>, %arg9: memref<1x8x128xf32, #tpu.memory_space<vmem>>, %arg10: memref<64x384xf32, #tpu.memory_space<vmem>>, %arg11: memref<8x128xf32, #tpu.memory_space<vmem>>) attributes {dimension_semantics = [#tpu.dimension_semantics<parallel>, #tpu.dimension_semantics<arbitrary>], iteration_bounds = array<i64: 1, 1>, scalar_prefetch = 0 : i64, scratch_operands = 2 : i64, tpu.core_type = #tpu.core_type<tc>, window_params = [{transform_indices = @transform_0, window_bounds = array<i64: 1, 64, 128>}, {transform_indices = @transform_1, window_bounds = array<i64: 1, 8, 1>}, {pipeline_mode = #tpu.pipeline_mode<synchronous>, transform_indices = @transform_2, window_bounds = array<i64: 128, 384>}, {pipeline_mode = #tpu.pipeline_mode<synchronous>, transform_indices = @transform_3, window_bounds = array<i64: 128, 384>}, {pipeline_mode = #tpu.pipeline_mode<synchronous>, transform_indices = @transform_4, window_bounds = array<i64: 1, 384>}, {pipeline_mode = #tpu.pipeline_mode<synchronous>, transform_indices = @transform_5, window_bounds = array<i64: 1, 128>}, {transform_indices = @transform_6, window_bounds = array<i64: 1, 64, 128>}, {transform_indices = @transform_7, window_bounds = array<i64: 1, 8, 128>}]} {
    %c0_i32 = arith.constant 0 : i32
    %0 = arith.cmpi eq, %arg1, %c0_i32 : i32
    %1 = arith.extui %0 : i1 to i32
    %c0_i32_0 = arith.constant 0 : i32
    %2 = arith.cmpi ne, %1, %c0_i32_0 : i32
    scf.if %2 {
      %cst_95 = arith.constant 0.000000e+00 : f32
      %372 = vector.broadcast %cst_95 : f32 to vector<8x128xf32>
      %c0_96 = arith.constant 0 : index
      %c0_97 = arith.constant 0 : index
      %373 = vector.load %arg11[%c0_96, %c0_97] : memref<8x128xf32, #tpu.memory_space<vmem>>, vector<8x128xf32>
      tpu.vector_store %arg11[%c0_96, %c0_97], %372 {strides = array<i32>} : memref<8x128xf32, #tpu.memory_space<vmem>>, vector<8x128xf32>,
    } else {
    }
    %c0 = arith.constant 0 : index
    %c0_1 = arith.constant 0 : index
    %c0_2 = arith.constant 0 : index
    %3 = vector.load %arg2[%c0, %c0_1, %c0_2] : memref<1x64x128xbf16, #tpu.memory_space<vmem>>, vector<1x64x128xbf16>
    %4 = vector.shape_cast %3 : vector<1x64x128xbf16> to vector<64x128xbf16>
    %c0_3 = arith.constant 0 : index
    %c0_4 = arith.constant 0 : index
    %5 = vector.load %arg4[%c0_3, %c0_4] : memref<128x384xbf16, #tpu.memory_space<vmem>>, vector<128x384xbf16>
    %cst = arith.constant dense<0.000000e+00> : vector<64x384xf32>
    %6 = tpu.matmul %4, %5, %cst {dimension_numbers = #tpu.dot_dimension_numbers<[1], [0], [0], [1], [0, 0, 1, 1], [], []>} : vector<64x128xbf16>, vector<128x384xbf16>, vector<64x384xf32> -> vector<64x384xf32>
    %c0_5 = arith.constant 0 : index
    %c0_6 = arith.constant 0 : index
    %7 = vector.load %arg6[%c0_5, %c0_6] : memref<1x384xf32, #tpu.memory_space<vmem>>, vector<1x384xf32>
    %8 = vector.broadcast %7 : vector<1x384xf32> to vector<64x384xf32>
    %9 = arith.addf %6, %8 : vector<64x384xf32>
    %c0_7 = arith.constant 0 : index
    %c0_8 = arith.constant 0 : index
    %10 = vector.load %arg10[%c0_7, %c0_8] : memref<64x384xf32, #tpu.memory_space<vmem>>, vector<64x384xf32>
    tpu.vector_store %arg10[%c0_7, %c0_8], %9 {strides = array<i32>} : memref<64x384xf32, #tpu.memory_space<vmem>>, vector<64x384xf32>,
    %c0_9 = arith.constant 0 : index
    %c0_10 = arith.constant 0 : index
    %c0_11 = arith.constant 0 : index
    %11 = vector.load %arg3[%c0_9, %c0_10, %c0_11] : memref<1x8x1xi32, #tpu.memory_space<vmem>>, vector<1x8x1xi32>
    %12 = vector.shape_cast %11 : vector<1x8x1xi32> to vector<8x1xi32>
    %c0_12 = arith.constant 0 : index
    %c0_13 = arith.constant 0 : index
    %13 = vector.load %arg5[%c0_12, %c0_13] : memref<128x384xbf16, #tpu.memory_space<vmem>>, vector<128x384xbf16>
    %c0_14 = arith.constant 0 : index
    %c0_15 = arith.constant 0 : index
    %14 = vector.load %arg7[%c0_14, %c0_15] : memref<1x128xf32, #tpu.memory_space<vmem>>, vector<1x128xf32>
    %c0_16 = arith.constant 0 : index
    %c0_17 = arith.constant 0 : index
    %15 = vector.load %arg11[%c0_16, %c0_17] : memref<8x128xf32, #tpu.memory_space<vmem>>, vector<8x128xf32>
    %c8_i32 = arith.constant 8 : i32
    %16 = arith.muli %arg1, %c8_i32 : i32
    %c0_i32_18 = arith.constant 0 : i32
    %17 = arith.addi %16, %c0_i32_18 : i32
    %18 = arith.truncf %15 : vector<8x128xf32> to vector<8x128xbf16>
    %cst_19 = arith.constant dense<0.000000e+00> : vector<8x384xf32>
    %19 = tpu.matmul %18, %13, %cst_19 {dimension_numbers = #tpu.dot_dimension_numbers<[1], [0], [0], [1], [0, 0, 1, 1], [], []>} : vector<8x128xbf16>, vector<128x384xbf16>, vector<8x384xf32> -> vector<8x384xf32>
    %c0_20 = arith.constant 0 : index
    %c0_21 = arith.constant 0 : index
    %20 = vector.load %arg10[%c0_20, %c0_21] : memref<64x384xf32, #tpu.memory_space<vmem>>, vector<8x384xf32>
    %21 = vector.extract_strided_slice %20 {offsets = [0, 0], sizes = [8, 128], strides = [1, 1]} : vector<8x384xf32> to vector<8x128xf32>
    %22 = vector.extract_strided_slice %19 {offsets = [0, 0], sizes = [8, 128], strides = [1, 1]} : vector<8x384xf32> to vector<8x128xf32>
    %23 = arith.addf %21, %22 : vector<8x128xf32>
    %24 = arith.negf %23 : vector<8x128xf32>
    %25 = math.exp %24 : vector<8x128xf32>
    %cst_22 = arith.constant 1.000000e+00 : f32
    %26 = vector.broadcast %cst_22 : f32 to vector<8x128xf32>
    %27 = arith.addf %26, %25 : vector<8x128xf32>
    %28 = arith.divf %26, %27 : vector<8x128xf32>
    %29 = vector.extract_strided_slice %20 {offsets = [0, 128], sizes = [8, 128], strides = [1, 1]} : vector<8x384xf32> to vector<8x128xf32>
    %30 = vector.extract_strided_slice %19 {offsets = [0, 128], sizes = [8, 128], strides = [1, 1]} : vector<8x384xf32> to vector<8x128xf32>
    %31 = arith.addf %29, %30 : vector<8x128xf32>
    %32 = arith.negf %31 : vector<8x128xf32>
    %33 = math.exp %32 : vector<8x128xf32>
    %cst_23 = arith.constant 1.000000e+00 : f32
    %34 = vector.broadcast %cst_23 : f32 to vector<8x128xf32>
    %35 = arith.addf %34, %33 : vector<8x128xf32>
    %36 = arith.divf %34, %35 : vector<8x128xf32>
    %37 = vector.extract_strided_slice %20 {offsets = [0, 256], sizes = [8, 128], strides = [1, 1]} : vector<8x384xf32> to vector<8x128xf32>
    %38 = vector.extract_strided_slice %19 {offsets = [0, 256], sizes = [8, 128], strides = [1, 1]} : vector<8x384xf32> to vector<8x128xf32>
    %39 = vector.broadcast %14 : vector<1x128xf32> to vector<8x128xf32>
    %40 = arith.addf %38, %39 : vector<8x128xf32>
    %41 = arith.mulf %28, %40 : vector<8x128xf32>
    %42 = arith.addf %37, %41 : vector<8x128xf32>
    %43 = math.tanh %42 : vector<8x128xf32>
    %44 = arith.subf %15, %43 : vector<8x128xf32>
    %45 = arith.mulf %36, %44 : vector<8x128xf32>
    %46 = arith.addf %43, %45 : vector<8x128xf32>
    %47 = vector.broadcast %17 : i32 to vector<8x1xi32>
    %48 = arith.cmpi slt, %47, %12 : vector<8x1xi32>
    %49 = vector.shape_cast %48 : vector<8x1xi1> to vector<8x1xi1>
    %50 = vector.broadcast %49 : vector<8x1xi1> to vector<8x128xi1>
    %51 = arith.select %50, %46, %15 : vector<8x128xi1>, vector<8x128xf32>
    %cst_24 = arith.constant 0.000000e+00 : f32
    %52 = vector.shape_cast %48 : vector<8x1xi1> to vector<8x1xi1>
    %53 = vector.broadcast %52 : vector<8x1xi1> to vector<8x128xi1>
    %54 = vector.broadcast %cst_24 : f32 to vector<8x128xf32>
    %55 = arith.select %53, %46, %54 : vector<8x128xi1>, vector<8x128xf32>
    %56 = arith.truncf %55 : vector<8x128xf32> to vector<8x128xbf16>
    %c0_25 = arith.constant 0 : index
    %c0_26 = arith.constant 0 : index
    %c0_27 = arith.constant 0 : index
    %57 = vector.load %arg8[%c0_25, %c0_26, %c0_27] : memref<1x64x128xbf16, #tpu.memory_space<vmem>>, vector<1x8x128xbf16>
    %58 = vector.shape_cast %57 : vector<1x8x128xbf16> to vector<8x128xbf16>
    %59 = vector.shape_cast %56 : vector<8x128xbf16> to vector<1x8x128xbf16>
    tpu.vector_store %arg8[%c0_25, %c0_26, %c0_27], %59 {strides = array<i32>} : memref<1x64x128xbf16, #tpu.memory_space<vmem>>, vector<1x8x128xbf16>,
    %c8_i32_28 = arith.constant 8 : i32
    %60 = arith.muli %arg1, %c8_i32_28 : i32
    %c1_i32 = arith.constant 1 : i32
    %61 = arith.addi %60, %c1_i32 : i32
    %62 = arith.truncf %51 : vector<8x128xf32> to vector<8x128xbf16>
    %cst_29 = arith.constant dense<0.000000e+00> : vector<8x384xf32>
    %63 = tpu.matmul %62, %13, %cst_29 {dimension_numbers = #tpu.dot_dimension_numbers<[1], [0], [0], [1], [0, 0, 1, 1], [], []>} : vector<8x128xbf16>, vector<128x384xbf16>, vector<8x384xf32> -> vector<8x384xf32>
    %c8 = arith.constant 8 : index
    %c0_30 = arith.constant 0 : index
    %64 = vector.load %arg10[%c8, %c0_30] : memref<64x384xf32, #tpu.memory_space<vmem>>, vector<8x384xf32>
    %65 = vector.extract_strided_slice %64 {offsets = [0, 0], sizes = [8, 128], strides = [1, 1]} : vector<8x384xf32> to vector<8x128xf32>
    %66 = vector.extract_strided_slice %63 {offsets = [0, 0], sizes = [8, 128], strides = [1, 1]} : vector<8x384xf32> to vector<8x128xf32>
    %67 = arith.addf %65, %66 : vector<8x128xf32>
    %68 = arith.negf %67 : vector<8x128xf32>
    %69 = math.exp %68 : vector<8x128xf32>
    %cst_31 = arith.constant 1.000000e+00 : f32
    %70 = vector.broadcast %cst_31 : f32 to vector<8x128xf32>
    %71 = arith.addf %70, %69 : vector<8x128xf32>
    %72 = arith.divf %70, %71 : vector<8x128xf32>
    %73 = vector.extract_strided_slice %64 {offsets = [0, 128], sizes = [8, 128], strides = [1, 1]} : vector<8x384xf32> to vector<8x128xf32>
    %74 = vector.extract_strided_slice %63 {offsets = [0, 128], sizes = [8, 128], strides = [1, 1]} : vector<8x384xf32> to vector<8x128xf32>
    %75 = arith.addf %73, %74 : vector<8x128xf32>
    %76 = arith.negf %75 : vector<8x128xf32>
    %77 = math.exp %76 : vector<8x128xf32>
    %cst_32 = arith.constant 1.000000e+00 : f32
    %78 = vector.broadcast %cst_32 : f32 to vector<8x128xf32>
    %79 = arith.addf %78, %77 : vector<8x128xf32>
    %80 = arith.divf %78, %79 : vector<8x128xf32>
    %81 = vector.extract_strided_slice %64 {offsets = [0, 256], sizes = [8, 128], strides = [1, 1]} : vector<8x384xf32> to vector<8x128xf32>
    %82 = vector.extract_strided_slice %63 {offsets = [0, 256], sizes = [8, 128], strides = [1, 1]} : vector<8x384xf32> to vector<8x128xf32>
    %83 = vector.broadcast %14 : vector<1x128xf32> to vector<8x128xf32>
    %84 = arith.addf %82, %83 : vector<8x128xf32>
    %85 = arith.mulf %72, %84 : vector<8x128xf32>
    %86 = arith.addf %81, %85 : vector<8x128xf32>
    %87 = math.tanh %86 : vector<8x128xf32>
    %88 = arith.subf %51, %87 : vector<8x128xf32>
    %89 = arith.mulf %80, %88 : vector<8x128xf32>
    %90 = arith.addf %87, %89 : vector<8x128xf32>
    %91 = vector.broadcast %61 : i32 to vector<8x1xi32>
    %92 = arith.cmpi slt, %91, %12 : vector<8x1xi32>
    %93 = vector.shape_cast %92 : vector<8x1xi1> to vector<8x1xi1>
    %94 = vector.broadcast %93 : vector<8x1xi1> to vector<8x128xi1>
    %95 = arith.select %94, %90, %51 : vector<8x128xi1>, vector<8x128xf32>
    %cst_33 = arith.constant 0.000000e+00 : f32
    %96 = vector.shape_cast %92 : vector<8x1xi1> to vector<8x1xi1>
    %97 = vector.broadcast %96 : vector<8x1xi1> to vector<8x128xi1>
    %98 = vector.broadcast %cst_33 : f32 to vector<8x128xf32>
    %99 = arith.select %97, %90, %98 : vector<8x128xi1>, vector<8x128xf32>
    %100 = arith.truncf %99 : vector<8x128xf32> to vector<8x128xbf16>
    %c0_34 = arith.constant 0 : index
    %c8_35 = arith.constant 8 : index
    %c0_36 = arith.constant 0 : index
    %101 = vector.load %arg8[%c0_34, %c8_35, %c0_36] : memref<1x64x128xbf16, #tpu.memory_space<vmem>>, vector<1x8x128xbf16>
    %102 = vector.shape_cast %101 : vector<1x8x128xbf16> to vector<8x128xbf16>
    %103 = vector.shape_cast %100 : vector<8x128xbf16> to vector<1x8x128xbf16>
    tpu.vector_store %arg8[%c0_34, %c8_35, %c0_36], %103 {strides = array<i32>} : memref<1x64x128xbf16, #tpu.memory_space<vmem>>, vector<1x8x128xbf16>,
    %c8_i32_37 = arith.constant 8 : i32
    %104 = arith.muli %arg1, %c8_i32_37 : i32
    %c2_i32 = arith.constant 2 : i32
    %105 = arith.addi %104, %c2_i32 : i32
    %106 = arith.truncf %95 : vector<8x128xf32> to vector<8x128xbf16>
    %cst_38 = arith.constant dense<0.000000e+00> : vector<8x384xf32>
    %107 = tpu.matmul %106, %13, %cst_38 {dimension_numbers = #tpu.dot_dimension_numbers<[1], [0], [0], [1], [0, 0, 1, 1], [], []>} : vector<8x128xbf16>, vector<128x384xbf16>, vector<8x384xf32> -> vector<8x384xf32>
    %c16 = arith.constant 16 : index
    %c0_39 = arith.constant 0 : index
    %108 = vector.load %arg10[%c16, %c0_39] : memref<64x384xf32, #tpu.memory_space<vmem>>, vector<8x384xf32>
    %109 = vector.extract_strided_slice %108 {offsets = [0, 0], sizes = [8, 128], strides = [1, 1]} : vector<8x384xf32> to vector<8x128xf32>
    %110 = vector.extract_strided_slice %107 {offsets = [0, 0], sizes = [8, 128], strides = [1, 1]} : vector<8x384xf32> to vector<8x128xf32>
    %111 = arith.addf %109, %110 : vector<8x128xf32>
    %112 = arith.negf %111 : vector<8x128xf32>
    %113 = math.exp %112 : vector<8x128xf32>
    %cst_40 = arith.constant 1.000000e+00 : f32
    %114 = vector.broadcast %cst_40 : f32 to vector<8x128xf32>
    %115 = arith.addf %114, %113 : vector<8x128xf32>
    %116 = arith.divf %114, %115 : vector<8x128xf32>
    %117 = vector.extract_strided_slice %108 {offsets = [0, 128], sizes = [8, 128], strides = [1, 1]} : vector<8x384xf32> to vector<8x128xf32>
    %118 = vector.extract_strided_slice %107 {offsets = [0, 128], sizes = [8, 128], strides = [1, 1]} : vector<8x384xf32> to vector<8x128xf32>
    %119 = arith.addf %117, %118 : vector<8x128xf32>
    %120 = arith.negf %119 : vector<8x128xf32>
    %121 = math.exp %120 : vector<8x128xf32>
    %cst_41 = arith.constant 1.000000e+00 : f32
    %122 = vector.broadcast %cst_41 : f32 to vector<8x128xf32>
    %123 = arith.addf %122, %121 : vector<8x128xf32>
    %124 = arith.divf %122, %123 : vector<8x128xf32>
    %125 = vector.extract_strided_slice %108 {offsets = [0, 256], sizes = [8, 128], strides = [1, 1]} : vector<8x384xf32> to vector<8x128xf32>
    %126 = vector.extract_strided_slice %107 {offsets = [0, 256], sizes = [8, 128], strides = [1, 1]} : vector<8x384xf32> to vector<8x128xf32>
    %127 = vector.broadcast %14 : vector<1x128xf32> to vector<8x128xf32>
    %128 = arith.addf %126, %127 : vector<8x128xf32>
    %129 = arith.mulf %116, %128 : vector<8x128xf32>
    %130 = arith.addf %125, %129 : vector<8x128xf32>
    %131 = math.tanh %130 : vector<8x128xf32>
    %132 = arith.subf %95, %131 : vector<8x128xf32>
    %133 = arith.mulf %124, %132 : vector<8x128xf32>
    %134 = arith.addf %131, %133 : vector<8x128xf32>
    %135 = vector.broadcast %105 : i32 to vector<8x1xi32>
    %136 = arith.cmpi slt, %135, %12 : vector<8x1xi32>
    %137 = vector.shape_cast %136 : vector<8x1xi1> to vector<8x1xi1>
    %138 = vector.broadcast %137 : vector<8x1xi1> to vector<8x128xi1>
    %139 = arith.select %138, %134, %95 : vector<8x128xi1>, vector<8x128xf32>
    %cst_42 = arith.constant 0.000000e+00 : f32
    %140 = vector.shape_cast %136 : vector<8x1xi1> to vector<8x1xi1>
    %141 = vector.broadcast %140 : vector<8x1xi1> to vector<8x128xi1>
    %142 = vector.broadcast %cst_42 : f32 to vector<8x128xf32>
    %143 = arith.select %141, %134, %142 : vector<8x128xi1>, vector<8x128xf32>
    %144 = arith.truncf %143 : vector<8x128xf32> to vector<8x128xbf16>
    %c0_43 = arith.constant 0 : index
    %c16_44 = arith.constant 16 : index
    %c0_45 = arith.constant 0 : index
    %145 = vector.load %arg8[%c0_43, %c16_44, %c0_45] : memref<1x64x128xbf16, #tpu.memory_space<vmem>>, vector<1x8x128xbf16>
    %146 = vector.shape_cast %145 : vector<1x8x128xbf16> to vector<8x128xbf16>
    %147 = vector.shape_cast %144 : vector<8x128xbf16> to vector<1x8x128xbf16>
    tpu.vector_store %arg8[%c0_43, %c16_44, %c0_45], %147 {strides = array<i32>} : memref<1x64x128xbf16, #tpu.memory_space<vmem>>, vector<1x8x128xbf16>,
    %c8_i32_46 = arith.constant 8 : i32
    %148 = arith.muli %arg1, %c8_i32_46 : i32
    %c3_i32 = arith.constant 3 : i32
    %149 = arith.addi %148, %c3_i32 : i32
    %150 = arith.truncf %139 : vector<8x128xf32> to vector<8x128xbf16>
    %cst_47 = arith.constant dense<0.000000e+00> : vector<8x384xf32>
    %151 = tpu.matmul %150, %13, %cst_47 {dimension_numbers = #tpu.dot_dimension_numbers<[1], [0], [0], [1], [0, 0, 1, 1], [], []>} : vector<8x128xbf16>, vector<128x384xbf16>, vector<8x384xf32> -> vector<8x384xf32>
    %c24 = arith.constant 24 : index
    %c0_48 = arith.constant 0 : index
    %152 = vector.load %arg10[%c24, %c0_48] : memref<64x384xf32, #tpu.memory_space<vmem>>, vector<8x384xf32>
    %153 = vector.extract_strided_slice %152 {offsets = [0, 0], sizes = [8, 128], strides = [1, 1]} : vector<8x384xf32> to vector<8x128xf32>
    %154 = vector.extract_strided_slice %151 {offsets = [0, 0], sizes = [8, 128], strides = [1, 1]} : vector<8x384xf32> to vector<8x128xf32>
    %155 = arith.addf %153, %154 : vector<8x128xf32>
    %156 = arith.negf %155 : vector<8x128xf32>
    %157 = math.exp %156 : vector<8x128xf32>
    %cst_49 = arith.constant 1.000000e+00 : f32
    %158 = vector.broadcast %cst_49 : f32 to vector<8x128xf32>
    %159 = arith.addf %158, %157 : vector<8x128xf32>
    %160 = arith.divf %158, %159 : vector<8x128xf32>
    %161 = vector.extract_strided_slice %152 {offsets = [0, 128], sizes = [8, 128], strides = [1, 1]} : vector<8x384xf32> to vector<8x128xf32>
    %162 = vector.extract_strided_slice %151 {offsets = [0, 128], sizes = [8, 128], strides = [1, 1]} : vector<8x384xf32> to vector<8x128xf32>
    %163 = arith.addf %161, %162 : vector<8x128xf32>
    %164 = arith.negf %163 : vector<8x128xf32>
    %165 = math.exp %164 : vector<8x128xf32>
    %cst_50 = arith.constant 1.000000e+00 : f32
    %166 = vector.broadcast %cst_50 : f32 to vector<8x128xf32>
    %167 = arith.addf %166, %165 : vector<8x128xf32>
    %168 = arith.divf %166, %167 : vector<8x128xf32>
    %169 = vector.extract_strided_slice %152 {offsets = [0, 256], sizes = [8, 128], strides = [1, 1]} : vector<8x384xf32> to vector<8x128xf32>
    %170 = vector.extract_strided_slice %151 {offsets = [0, 256], sizes = [8, 128], strides = [1, 1]} : vector<8x384xf32> to vector<8x128xf32>
    %171 = vector.broadcast %14 : vector<1x128xf32> to vector<8x128xf32>
    %172 = arith.addf %170, %171 : vector<8x128xf32>
    %173 = arith.mulf %160, %172 : vector<8x128xf32>
    %174 = arith.addf %169, %173 : vector<8x128xf32>
    %175 = math.tanh %174 : vector<8x128xf32>
    %176 = arith.subf %139, %175 : vector<8x128xf32>
    %177 = arith.mulf %168, %176 : vector<8x128xf32>
    %178 = arith.addf %175, %177 : vector<8x128xf32>
    %179 = vector.broadcast %149 : i32 to vector<8x1xi32>
    %180 = arith.cmpi slt, %179, %12 : vector<8x1xi32>
    %181 = vector.shape_cast %180 : vector<8x1xi1> to vector<8x1xi1>
    %182 = vector.broadcast %181 : vector<8x1xi1> to vector<8x128xi1>
    %183 = arith.select %182, %178, %139 : vector<8x128xi1>, vector<8x128xf32>
    %cst_51 = arith.constant 0.000000e+00 : f32
    %184 = vector.shape_cast %180 : vector<8x1xi1> to vector<8x1xi1>
    %185 = vector.broadcast %184 : vector<8x1xi1> to vector<8x128xi1>
    %186 = vector.broadcast %cst_51 : f32 to vector<8x128xf32>
    %187 = arith.select %185, %178, %186 : vector<8x128xi1>, vector<8x128xf32>
    %188 = arith.truncf %187 : vector<8x128xf32> to vector<8x128xbf16>
    %c0_52 = arith.constant 0 : index
    %c24_53 = arith.constant 24 : index
    %c0_54 = arith.constant 0 : index
    %189 = vector.load %arg8[%c0_52, %c24_53, %c0_54] : memref<1x64x128xbf16, #tpu.memory_space<vmem>>, vector<1x8x128xbf16>
    %190 = vector.shape_cast %189 : vector<1x8x128xbf16> to vector<8x128xbf16>
    %191 = vector.shape_cast %188 : vector<8x128xbf16> to vector<1x8x128xbf16>
    tpu.vector_store %arg8[%c0_52, %c24_53, %c0_54], %191 {strides = array<i32>} : memref<1x64x128xbf16, #tpu.memory_space<vmem>>, vector<1x8x128xbf16>,
    %c8_i32_55 = arith.constant 8 : i32
    %192 = arith.muli %arg1, %c8_i32_55 : i32
    %c4_i32 = arith.constant 4 : i32
    %193 = arith.addi %192, %c4_i32 : i32
    %194 = arith.truncf %183 : vector<8x128xf32> to vector<8x128xbf16>
    %cst_56 = arith.constant dense<0.000000e+00> : vector<8x384xf32>
    %195 = tpu.matmul %194, %13, %cst_56 {dimension_numbers = #tpu.dot_dimension_numbers<[1], [0], [0], [1], [0, 0, 1, 1], [], []>} : vector<8x128xbf16>, vector<128x384xbf16>, vector<8x384xf32> -> vector<8x384xf32>
    %c32 = arith.constant 32 : index
    %c0_57 = arith.constant 0 : index
    %196 = vector.load %arg10[%c32, %c0_57] : memref<64x384xf32, #tpu.memory_space<vmem>>, vector<8x384xf32>
    %197 = vector.extract_strided_slice %196 {offsets = [0, 0], sizes = [8, 128], strides = [1, 1]} : vector<8x384xf32> to vector<8x128xf32>
    %198 = vector.extract_strided_slice %195 {offsets = [0, 0], sizes = [8, 128], strides = [1, 1]} : vector<8x384xf32> to vector<8x128xf32>
    %199 = arith.addf %197, %198 : vector<8x128xf32>
    %200 = arith.negf %199 : vector<8x128xf32>
    %201 = math.exp %200 : vector<8x128xf32>
    %cst_58 = arith.constant 1.000000e+00 : f32
    %202 = vector.broadcast %cst_58 : f32 to vector<8x128xf32>
    %203 = arith.addf %202, %201 : vector<8x128xf32>
    %204 = arith.divf %202, %203 : vector<8x128xf32>
    %205 = vector.extract_strided_slice %196 {offsets = [0, 128], sizes = [8, 128], strides = [1, 1]} : vector<8x384xf32> to vector<8x128xf32>
    %206 = vector.extract_strided_slice %195 {offsets = [0, 128], sizes = [8, 128], strides = [1, 1]} : vector<8x384xf32> to vector<8x128xf32>
    %207 = arith.addf %205, %206 : vector<8x128xf32>
    %208 = arith.negf %207 : vector<8x128xf32>
    %209 = math.exp %208 : vector<8x128xf32>
    %cst_59 = arith.constant 1.000000e+00 : f32
    %210 = vector.broadcast %cst_59 : f32 to vector<8x128xf32>
    %211 = arith.addf %210, %209 : vector<8x128xf32>
    %212 = arith.divf %210, %211 : vector<8x128xf32>
    %213 = vector.extract_strided_slice %196 {offsets = [0, 256], sizes = [8, 128], strides = [1, 1]} : vector<8x384xf32> to vector<8x128xf32>
    %214 = vector.extract_strided_slice %195 {offsets = [0, 256], sizes = [8, 128], strides = [1, 1]} : vector<8x384xf32> to vector<8x128xf32>
    %215 = vector.broadcast %14 : vector<1x128xf32> to vector<8x128xf32>
    %216 = arith.addf %214, %215 : vector<8x128xf32>
    %217 = arith.mulf %204, %216 : vector<8x128xf32>
    %218 = arith.addf %213, %217 : vector<8x128xf32>
    %219 = math.tanh %218 : vector<8x128xf32>
    %220 = arith.subf %183, %219 : vector<8x128xf32>
    %221 = arith.mulf %212, %220 : vector<8x128xf32>
    %222 = arith.addf %219, %221 : vector<8x128xf32>
    %223 = vector.broadcast %193 : i32 to vector<8x1xi32>
    %224 = arith.cmpi slt, %223, %12 : vector<8x1xi32>
    %225 = vector.shape_cast %224 : vector<8x1xi1> to vector<8x1xi1>
    %226 = vector.broadcast %225 : vector<8x1xi1> to vector<8x128xi1>
    %227 = arith.select %226, %222, %183 : vector<8x128xi1>, vector<8x128xf32>
    %cst_60 = arith.constant 0.000000e+00 : f32
    %228 = vector.shape_cast %224 : vector<8x1xi1> to vector<8x1xi1>
    %229 = vector.broadcast %228 : vector<8x1xi1> to vector<8x128xi1>
    %230 = vector.broadcast %cst_60 : f32 to vector<8x128xf32>
    %231 = arith.select %229, %222, %230 : vector<8x128xi1>, vector<8x128xf32>
    %232 = arith.truncf %231 : vector<8x128xf32> to vector<8x128xbf16>
    %c0_61 = arith.constant 0 : index
    %c32_62 = arith.constant 32 : index
    %c0_63 = arith.constant 0 : index
    %233 = vector.load %arg8[%c0_61, %c32_62, %c0_63] : memref<1x64x128xbf16, #tpu.memory_space<vmem>>, vector<1x8x128xbf16>
    %234 = vector.shape_cast %233 : vector<1x8x128xbf16> to vector<8x128xbf16>
    %235 = vector.shape_cast %232 : vector<8x128xbf16> to vector<1x8x128xbf16>
    tpu.vector_store %arg8[%c0_61, %c32_62, %c0_63], %235 {strides = array<i32>} : memref<1x64x128xbf16, #tpu.memory_space<vmem>>, vector<1x8x128xbf16>,
    %c8_i32_64 = arith.constant 8 : i32
    %236 = arith.muli %arg1, %c8_i32_64 : i32
    %c5_i32 = arith.constant 5 : i32
    %237 = arith.addi %236, %c5_i32 : i32
    %238 = arith.truncf %227 : vector<8x128xf32> to vector<8x128xbf16>
    %cst_65 = arith.constant dense<0.000000e+00> : vector<8x384xf32>
    %239 = tpu.matmul %238, %13, %cst_65 {dimension_numbers = #tpu.dot_dimension_numbers<[1], [0], [0], [1], [0, 0, 1, 1], [], []>} : vector<8x128xbf16>, vector<128x384xbf16>, vector<8x384xf32> -> vector<8x384xf32>
    %c40 = arith.constant 40 : index
    %c0_66 = arith.constant 0 : index
    %240 = vector.load %arg10[%c40, %c0_66] : memref<64x384xf32, #tpu.memory_space<vmem>>, vector<8x384xf32>
    %241 = vector.extract_strided_slice %240 {offsets = [0, 0], sizes = [8, 128], strides = [1, 1]} : vector<8x384xf32> to vector<8x128xf32>
    %242 = vector.extract_strided_slice %239 {offsets = [0, 0], sizes = [8, 128], strides = [1, 1]} : vector<8x384xf32> to vector<8x128xf32>
    %243 = arith.addf %241, %242 : vector<8x128xf32>
    %244 = arith.negf %243 : vector<8x128xf32>
    %245 = math.exp %244 : vector<8x128xf32>
    %cst_67 = arith.constant 1.000000e+00 : f32
    %246 = vector.broadcast %cst_67 : f32 to vector<8x128xf32>
    %247 = arith.addf %246, %245 : vector<8x128xf32>
    %248 = arith.divf %246, %247 : vector<8x128xf32>
    %249 = vector.extract_strided_slice %240 {offsets = [0, 128], sizes = [8, 128], strides = [1, 1]} : vector<8x384xf32> to vector<8x128xf32>
    %250 = vector.extract_strided_slice %239 {offsets = [0, 128], sizes = [8, 128], strides = [1, 1]} : vector<8x384xf32> to vector<8x128xf32>
    %251 = arith.addf %249, %250 : vector<8x128xf32>
    %252 = arith.negf %251 : vector<8x128xf32>
    %253 = math.exp %252 : vector<8x128xf32>
    %cst_68 = arith.constant 1.000000e+00 : f32
    %254 = vector.broadcast %cst_68 : f32 to vector<8x128xf32>
    %255 = arith.addf %254, %253 : vector<8x128xf32>
    %256 = arith.divf %254, %255 : vector<8x128xf32>
    %257 = vector.extract_strided_slice %240 {offsets = [0, 256], sizes = [8, 128], strides = [1, 1]} : vector<8x384xf32> to vector<8x128xf32>
    %258 = vector.extract_strided_slice %239 {offsets = [0, 256], sizes = [8, 128], strides = [1, 1]} : vector<8x384xf32> to vector<8x128xf32>
    %259 = vector.broadcast %14 : vector<1x128xf32> to vector<8x128xf32>
    %260 = arith.addf %258, %259 : vector<8x128xf32>
    %261 = arith.mulf %248, %260 : vector<8x128xf32>
    %262 = arith.addf %257, %261 : vector<8x128xf32>
    %263 = math.tanh %262 : vector<8x128xf32>
    %264 = arith.subf %227, %263 : vector<8x128xf32>
    %265 = arith.mulf %256, %264 : vector<8x128xf32>
    %266 = arith.addf %263, %265 : vector<8x128xf32>
    %267 = vector.broadcast %237 : i32 to vector<8x1xi32>
    %268 = arith.cmpi slt, %267, %12 : vector<8x1xi32>
    %269 = vector.shape_cast %268 : vector<8x1xi1> to vector<8x1xi1>
    %270 = vector.broadcast %269 : vector<8x1xi1> to vector<8x128xi1>
    %271 = arith.select %270, %266, %227 : vector<8x128xi1>, vector<8x128xf32>
    %cst_69 = arith.constant 0.000000e+00 : f32
    %272 = vector.shape_cast %268 : vector<8x1xi1> to vector<8x1xi1>
    %273 = vector.broadcast %272 : vector<8x1xi1> to vector<8x128xi1>
    %274 = vector.broadcast %cst_69 : f32 to vector<8x128xf32>
    %275 = arith.select %273, %266, %274 : vector<8x128xi1>, vector<8x128xf32>
    %276 = arith.truncf %275 : vector<8x128xf32> to vector<8x128xbf16>
    %c0_70 = arith.constant 0 : index
    %c40_71 = arith.constant 40 : index
    %c0_72 = arith.constant 0 : index
    %277 = vector.load %arg8[%c0_70, %c40_71, %c0_72] : memref<1x64x128xbf16, #tpu.memory_space<vmem>>, vector<1x8x128xbf16>
    %278 = vector.shape_cast %277 : vector<1x8x128xbf16> to vector<8x128xbf16>
    %279 = vector.shape_cast %276 : vector<8x128xbf16> to vector<1x8x128xbf16>
    tpu.vector_store %arg8[%c0_70, %c40_71, %c0_72], %279 {strides = array<i32>} : memref<1x64x128xbf16, #tpu.memory_space<vmem>>, vector<1x8x128xbf16>,
    %c8_i32_73 = arith.constant 8 : i32
    %280 = arith.muli %arg1, %c8_i32_73 : i32
    %c6_i32 = arith.constant 6 : i32
    %281 = arith.addi %280, %c6_i32 : i32
    %282 = arith.truncf %271 : vector<8x128xf32> to vector<8x128xbf16>
    %cst_74 = arith.constant dense<0.000000e+00> : vector<8x384xf32>
    %283 = tpu.matmul %282, %13, %cst_74 {dimension_numbers = #tpu.dot_dimension_numbers<[1], [0], [0], [1], [0, 0, 1, 1], [], []>} : vector<8x128xbf16>, vector<128x384xbf16>, vector<8x384xf32> -> vector<8x384xf32>
    %c48 = arith.constant 48 : index
    %c0_75 = arith.constant 0 : index
    %284 = vector.load %arg10[%c48, %c0_75] : memref<64x384xf32, #tpu.memory_space<vmem>>, vector<8x384xf32>
    %285 = vector.extract_strided_slice %284 {offsets = [0, 0], sizes = [8, 128], strides = [1, 1]} : vector<8x384xf32> to vector<8x128xf32>
    %286 = vector.extract_strided_slice %283 {offsets = [0, 0], sizes = [8, 128], strides = [1, 1]} : vector<8x384xf32> to vector<8x128xf32>
    %287 = arith.addf %285, %286 : vector<8x128xf32>
    %288 = arith.negf %287 : vector<8x128xf32>
    %289 = math.exp %288 : vector<8x128xf32>
    %cst_76 = arith.constant 1.000000e+00 : f32
    %290 = vector.broadcast %cst_76 : f32 to vector<8x128xf32>
    %291 = arith.addf %290, %289 : vector<8x128xf32>
    %292 = arith.divf %290, %291 : vector<8x128xf32>
    %293 = vector.extract_strided_slice %284 {offsets = [0, 128], sizes = [8, 128], strides = [1, 1]} : vector<8x384xf32> to vector<8x128xf32>
    %294 = vector.extract_strided_slice %283 {offsets = [0, 128], sizes = [8, 128], strides = [1, 1]} : vector<8x384xf32> to vector<8x128xf32>
    %295 = arith.addf %293, %294 : vector<8x128xf32>
    %296 = arith.negf %295 : vector<8x128xf32>
    %297 = math.exp %296 : vector<8x128xf32>
    %cst_77 = arith.constant 1.000000e+00 : f32
    %298 = vector.broadcast %cst_77 : f32 to vector<8x128xf32>
    %299 = arith.addf %298, %297 : vector<8x128xf32>
    %300 = arith.divf %298, %299 : vector<8x128xf32>
    %301 = vector.extract_strided_slice %284 {offsets = [0, 256], sizes = [8, 128], strides = [1, 1]} : vector<8x384xf32> to vector<8x128xf32>
    %302 = vector.extract_strided_slice %283 {offsets = [0, 256], sizes = [8, 128], strides = [1, 1]} : vector<8x384xf32> to vector<8x128xf32>
    %303 = vector.broadcast %14 : vector<1x128xf32> to vector<8x128xf32>
    %304 = arith.addf %302, %303 : vector<8x128xf32>
    %305 = arith.mulf %292, %304 : vector<8x128xf32>
    %306 = arith.addf %301, %305 : vector<8x128xf32>
    %307 = math.tanh %306 : vector<8x128xf32>
    %308 = arith.subf %271, %307 : vector<8x128xf32>
    %309 = arith.mulf %300, %308 : vector<8x128xf32>
    %310 = arith.addf %307, %309 : vector<8x128xf32>
    %311 = vector.broadcast %281 : i32 to vector<8x1xi32>
    %312 = arith.cmpi slt, %311, %12 : vector<8x1xi32>
    %313 = vector.shape_cast %312 : vector<8x1xi1> to vector<8x1xi1>
    %314 = vector.broadcast %313 : vector<8x1xi1> to vector<8x128xi1>
    %315 = arith.select %314, %310, %271 : vector<8x128xi1>, vector<8x128xf32>
    %cst_78 = arith.constant 0.000000e+00 : f32
    %316 = vector.shape_cast %312 : vector<8x1xi1> to vector<8x1xi1>
    %317 = vector.broadcast %316 : vector<8x1xi1> to vector<8x128xi1>
    %318 = vector.broadcast %cst_78 : f32 to vector<8x128xf32>
    %319 = arith.select %317, %310, %318 : vector<8x128xi1>, vector<8x128xf32>
    %320 = arith.truncf %319 : vector<8x128xf32> to vector<8x128xbf16>
    %c0_79 = arith.constant 0 : index
    %c48_80 = arith.constant 48 : index
    %c0_81 = arith.constant 0 : index
    %321 = vector.load %arg8[%c0_79, %c48_80, %c0_81] : memref<1x64x128xbf16, #tpu.memory_space<vmem>>, vector<1x8x128xbf16>
    %322 = vector.shape_cast %321 : vector<1x8x128xbf16> to vector<8x128xbf16>
    %323 = vector.shape_cast %320 : vector<8x128xbf16> to vector<1x8x128xbf16>
    tpu.vector_store %arg8[%c0_79, %c48_80, %c0_81], %323 {strides = array<i32>} : memref<1x64x128xbf16, #tpu.memory_space<vmem>>, vector<1x8x128xbf16>,
    %c8_i32_82 = arith.constant 8 : i32
    %324 = arith.muli %arg1, %c8_i32_82 : i32
    %c7_i32 = arith.constant 7 : i32
    %325 = arith.addi %324, %c7_i32 : i32
    %326 = arith.truncf %315 : vector<8x128xf32> to vector<8x128xbf16>
    %cst_83 = arith.constant dense<0.000000e+00> : vector<8x384xf32>
    %327 = tpu.matmul %326, %13, %cst_83 {dimension_numbers = #tpu.dot_dimension_numbers<[1], [0], [0], [1], [0, 0, 1, 1], [], []>} : vector<8x128xbf16>, vector<128x384xbf16>, vector<8x384xf32> -> vector<8x384xf32>
    %c56 = arith.constant 56 : index
    %c0_84 = arith.constant 0 : index
    %328 = vector.load %arg10[%c56, %c0_84] : memref<64x384xf32, #tpu.memory_space<vmem>>, vector<8x384xf32>
    %329 = vector.extract_strided_slice %328 {offsets = [0, 0], sizes = [8, 128], strides = [1, 1]} : vector<8x384xf32> to vector<8x128xf32>
    %330 = vector.extract_strided_slice %327 {offsets = [0, 0], sizes = [8, 128], strides = [1, 1]} : vector<8x384xf32> to vector<8x128xf32>
    %331 = arith.addf %329, %330 : vector<8x128xf32>
    %332 = arith.negf %331 : vector<8x128xf32>
    %333 = math.exp %332 : vector<8x128xf32>
    %cst_85 = arith.constant 1.000000e+00 : f32
    %334 = vector.broadcast %cst_85 : f32 to vector<8x128xf32>
    %335 = arith.addf %334, %333 : vector<8x128xf32>
    %336 = arith.divf %334, %335 : vector<8x128xf32>
    %337 = vector.extract_strided_slice %328 {offsets = [0, 128], sizes = [8, 128], strides = [1, 1]} : vector<8x384xf32> to vector<8x128xf32>
    %338 = vector.extract_strided_slice %327 {offsets = [0, 128], sizes = [8, 128], strides = [1, 1]} : vector<8x384xf32> to vector<8x128xf32>
    %339 = arith.addf %337, %338 : vector<8x128xf32>
    %340 = arith.negf %339 : vector<8x128xf32>
    %341 = math.exp %340 : vector<8x128xf32>
    %cst_86 = arith.constant 1.000000e+00 : f32
    %342 = vector.broadcast %cst_86 : f32 to vector<8x128xf32>
    %343 = arith.addf %342, %341 : vector<8x128xf32>
    %344 = arith.divf %342, %343 : vector<8x128xf32>
    %345 = vector.extract_strided_slice %328 {offsets = [0, 256], sizes = [8, 128], strides = [1, 1]} : vector<8x384xf32> to vector<8x128xf32>
    %346 = vector.extract_strided_slice %327 {offsets = [0, 256], sizes = [8, 128], strides = [1, 1]} : vector<8x384xf32> to vector<8x128xf32>
    %347 = vector.broadcast %14 : vector<1x128xf32> to vector<8x128xf32>
    %348 = arith.addf %346, %347 : vector<8x128xf32>
    %349 = arith.mulf %336, %348 : vector<8x128xf32>
    %350 = arith.addf %345, %349 : vector<8x128xf32>
    %351 = math.tanh %350 : vector<8x128xf32>
    %352 = arith.subf %315, %351 : vector<8x128xf32>
    %353 = arith.mulf %344, %352 : vector<8x128xf32>
    %354 = arith.addf %351, %353 : vector<8x128xf32>
    %355 = vector.broadcast %325 : i32 to vector<8x1xi32>
    %356 = arith.cmpi slt, %355, %12 : vector<8x1xi32>
    %357 = vector.shape_cast %356 : vector<8x1xi1> to vector<8x1xi1>
    %358 = vector.broadcast %357 : vector<8x1xi1> to vector<8x128xi1>
    %359 = arith.select %358, %354, %315 : vector<8x128xi1>, vector<8x128xf32>
    %cst_87 = arith.constant 0.000000e+00 : f32
    %360 = vector.shape_cast %356 : vector<8x1xi1> to vector<8x1xi1>
    %361 = vector.broadcast %360 : vector<8x1xi1> to vector<8x128xi1>
    %362 = vector.broadcast %cst_87 : f32 to vector<8x128xf32>
    %363 = arith.select %361, %354, %362 : vector<8x128xi1>, vector<8x128xf32>
    %364 = arith.truncf %363 : vector<8x128xf32> to vector<8x128xbf16>
    %c0_88 = arith.constant 0 : index
    %c56_89 = arith.constant 56 : index
    %c0_90 = arith.constant 0 : index
    %365 = vector.load %arg8[%c0_88, %c56_89, %c0_90] : memref<1x64x128xbf16, #tpu.memory_space<vmem>>, vector<1x8x128xbf16>
    %366 = vector.shape_cast %365 : vector<1x8x128xbf16> to vector<8x128xbf16>
    %367 = vector.shape_cast %364 : vector<8x128xbf16> to vector<1x8x128xbf16>
    tpu.vector_store %arg8[%c0_88, %c56_89, %c0_90], %367 {strides = array<i32>} : memref<1x64x128xbf16, #tpu.memory_space<vmem>>, vector<1x8x128xbf16>,
    %c0_91 = arith.constant 0 : index
    %c0_92 = arith.constant 0 : index
    %368 = vector.load %arg11[%c0_91, %c0_92] : memref<8x128xf32, #tpu.memory_space<vmem>>, vector<8x128xf32>
    tpu.vector_store %arg11[%c0_91, %c0_92], %359 {strides = array<i32>} : memref<8x128xf32, #tpu.memory_space<vmem>>, vector<8x128xf32>,
    %c0_i32_93 = arith.constant 0 : i32
    %369 = arith.cmpi eq, %arg1, %c0_i32_93 : i32
    %370 = arith.extui %369 : i1 to i32
    %c0_i32_94 = arith.constant 0 : i32
    %371 = arith.cmpi ne, %370, %c0_i32_94 : i32
    scf.if %371 {
      %c0_95 = arith.constant 0 : index
      %c0_96 = arith.constant 0 : index
      %c0_97 = arith.constant 0 : index
      %372 = vector.load %arg9[%c0_95, %c0_96, %c0_97] : memref<1x8x128xf32, #tpu.memory_space<vmem>>, vector<1x8x128xf32>
      %373 = vector.shape_cast %372 : vector<1x8x128xf32> to vector<8x128xf32>
      %374 = vector.shape_cast %359 : vector<8x128xf32> to vector<1x8x128xf32>
      tpu.vector_store %arg9[%c0_95, %c0_96, %c0_97], %374 {strides = array<i32>} : memref<1x8x128xf32, #tpu.memory_space<vmem>>, vector<1x8x128xf32>,
    } else {
    }
    return
  }
  func.func @transform_0(%arg0: i32, %arg1: i32) -> (i32, i32, i32) {
    %c0_i32 = arith.constant 0 : i32
    %c0_i32_0 = arith.constant 0 : i32
    return %arg0, %arg1, %c0_i32 : i32, i32, i32
  }
  func.func @transform_1(%arg0: i32, %arg1: i32) -> (i32, i32, i32) {
    %c0_i32 = arith.constant 0 : i32
    %c0_i32_0 = arith.constant 0 : i32
    %c0_i32_1 = arith.constant 0 : i32
    return %arg0, %c0_i32, %c0_i32_0 : i32, i32, i32
  }
  func.func @transform_2(%arg0: i32, %arg1: i32) -> (i32, i32) {
    %c0_i32 = arith.constant 0 : i32
    %c0_i32_0 = arith.constant 0 : i32
    %c0_i32_1 = arith.constant 0 : i32
    return %c0_i32, %c0_i32_0 : i32, i32
  }
  func.func @transform_3(%arg0: i32, %arg1: i32) -> (i32, i32) {
    %c0_i32 = arith.constant 0 : i32
    %c0_i32_0 = arith.constant 0 : i32
    %c0_i32_1 = arith.constant 0 : i32
    return %c0_i32, %c0_i32_0 : i32, i32
  }
  func.func @transform_4(%arg0: i32, %arg1: i32) -> (i32, i32) {
    %c0_i32 = arith.constant 0 : i32
    %c0_i32_0 = arith.constant 0 : i32
    %c0_i32_1 = arith.constant 0 : i32
    return %c0_i32, %c0_i32_0 : i32, i32
  }
  func.func @transform_5(%arg0: i32, %arg1: i32) -> (i32, i32) {
    %c0_i32 = arith.constant 0 : i32
    %c0_i32_0 = arith.constant 0 : i32
    %c0_i32_1 = arith.constant 0 : i32
    return %c0_i32, %c0_i32_0 : i32, i32
  }
  func.func @transform_6(%arg0: i32, %arg1: i32) -> (i32, i32, i32) {
    %c0_i32 = arith.constant 0 : i32
    %c0_i32_0 = arith.constant 0 : i32
    return %arg0, %arg1, %c0_i32 : i32, i32, i32
  }
  func.func @transform_7(%arg0: i32, %arg1: i32) -> (i32, i32, i32) {
    %c0_i32 = arith.constant 0 : i32
    %c0_i32_0 = arith.constant 0 : i32
    %c0_i32_1 = arith.constant 0 : i32
    return %arg0, %c0_i32, %c0_i32_0 : i32, i32, i32
  }
}

</mosaic_0001>

<bundles_post_ra>
// kernel: tpu_custom_call.1
= control target key start
LH: loop header
LB: loop body
LE: loop exit
PB: predicated region body
PF: predicated region fallthrough
CT: control target
= control target key end

     0   :  { %13 = vsyncpa [#allocation5], 0  ;;  %s2866_s0 = inlined_call_operand.hbm [shape: bf16[1,64,128], index: 0, kind: input, shape index: {}]   ;;  %s2867_s1 = inlined_call_operand.vmem [shape: s32[1,8,1], index: 1, kind: input, shape index: {}]   ;;  %s2868_s2 = inlined_call_operand.hbm [shape: bf16[128,384], index: 2, kind: input, shape index: {}]   ;;  %s2869_s3 = inlined_call_operand.hbm [shape: bf16[128,384], index: 3, kind: input, shape index: {}]   ;;  %s2870_s4 = inlined_call_operand.vmem [shape: f32[1,384], index: 4, kind: input, shape index: {}]   ;;  %s2871_s5 = inlined_call_operand.vmem [shape: f32[1,128], index: 5, kind: input, shape index: {}]   ;;  %s2872_s6 = inlined_call_operand.hbm [shape: bf16[1,64,128], index: 6, kind: output, shape index: {0}]   ;;  %s2873_s7 = inlined_call_operand.hbm [shape: f32[1,8,128], index: 7, kind: output, shape index: {1}]  }
   0x1   :  { %14 = vsyncpa [#allocation8], 0 }
   0x2   :  { %15 = vsyncpa [#allocation6], 0 }
   0x3   :  { %16 = vsyncpa [#allocation12], 0  ;;  %s2251_s24 = smov [#allocation7]   ;;  %s2133_s28 = scalar_lea.hbm %s2868_s2, 3072 }
   0x4   :  { %s36_s25 = sshll.u32 %s2251_s24, 4  ;;  %p2134_p0 = scmp.ne.s32.totalorder %s2868_s2, %s2133_s28  ;;  %s37_s25 = int_to_ptr.vmem [resolvable:$true] %s36_s25 }
   0x5   :  { %p2137_p1 = scmp.lt.u32.totalorder %s2133_s28, %s2868_s2 }
   0x7   :  { %p2139_p2 = pnand %p2137_p1, %p2134_p0 }
   0x9   :  { %2142 = shalt.err (!%p2139_p2)
}
   0xa   :  { %s2143_s10 = scalar_lea.vmem %s37_s25, 3072  ;;  %p2148_p4 = scmp.lt.s32.totalorder %s37_s25, %s37_s25 }
   0xb   :  { %p2144_p3 = scmp.ne.s32.totalorder %s37_s25, %s2143_s10  ;;  %p2149_p5 = scmp.lt.s32.totalorder %s2143_s10, %s2143_s10 }
   0xd   :  { %p2150_p6 = por %p2149_p5, %p2148_p4 }
   0xf   :  { %p2151_p7 = pnand %p2150_p6, %p2144_p3 }
  0x11   :  { %2154 = shalt.err (!%p2151_p7)
}
  0x12   :  { %s2252_s11 = smov 192   ;;  %s2253_s12 = smov 12  }
  0x13   :  { %42 = dma.hbm_to_vmem [thread:$0]  %s2868_s2, 3072, %s37_s25, [#allocation8], %s2252_s11, %s2252_s11, %s2253_s12  }
  0x14   :  { %s2254_s15 = smov [#allocation4]   ;;  %s2155_s19 = scalar_lea.hbm %s2866_s0, 512 }
  0x15   :  { %s22_s16 = sshll.u32 %s2254_s15, 4  ;;  %p2156_p8 = scmp.ne.s32.totalorder %s2866_s0, %s2155_s19  ;;  %s23_s16 = int_to_ptr.vmem [resolvable:$true] %s22_s16 }
  0x16   :  { %p2159_p9 = scmp.lt.u32.totalorder %s2155_s19, %s2866_s0 }
  0x18   :  { %p2161_p10 = pnand %p2159_p9, %p2156_p8 }
  0x1a   :  { %2164 = shalt.err (!%p2161_p10)
}
  0x1b   :  { %s2165_s24 = scalar_lea.vmem %s23_s16, 512  ;;  %p2170_p12 = scmp.lt.s32.totalorder %s23_s16, %s23_s16 }
  0x1c   :  { %p2166_p11 = scmp.ne.s32.totalorder %s23_s16, %s2165_s24  ;;  %p2171_p13 = scmp.lt.s32.totalorder %s2165_s24, %s2165_s24 }
  0x1e   :  { %p2172_p0 = por %p2171_p13, %p2170_p12 }
  0x20   :  { %p2173_p1 = pnand %p2172_p0, %p2166_p11 }
  0x22   :  { %2176 = shalt.err (!%p2173_p1)
}
  0x23   :  { %s2255_s2 = smov 64   ;;  %s2256_s25 = smov 4  }
  0x24   :  { %28 = dma.hbm_to_vmem [thread:$0]  %s2866_s0, 512, %s23_s16, [#allocation5], %s2255_s2, %s2255_s2, %s2256_s25  }
  0x25   :  { %s2257_s28 = smov [#allocation9]   ;;  %s2177_s9 = scalar_lea.hbm %s2869_s3, 3072 }
  0x26   :  { %s48_s29 = sshll.u32 %s2257_s28, 4  ;;  %p2178_p2 = scmp.ne.s32.totalorder %s2869_s3, %s2177_s9  ;;  %s49_s29 = int_to_ptr.vmem [resolvable:$true] %s48_s29 }
  0x27   :  { %p2181_p3 = scmp.lt.u32.totalorder %s2177_s9, %s2869_s3 }
  0x29   :  { %p2183_p4 = pnand %p2181_p3, %p2178_p2 }
  0x2b   :  { %2186 = shalt.err (!%p2183_p4)
}
  0x2c   :  { %s2187_s17 = scalar_lea.vmem %s49_s29, 3072  ;;  %p2192_p6 = scmp.lt.s32.totalorder %s49_s29, %s49_s29 }
  0x2d   :  { %p2188_p5 = scmp.ne.s32.totalorder %s49_s29, %s2187_s17  ;;  %p2193_p7 = scmp.lt.s32.totalorder %s2187_s17, %s2187_s17 }
  0x2f   :  { %p2194_p8 = por %p2193_p7, %p2192_p6 }
  0x31   :  { %p2195_p9 = pnand %p2194_p8, %p2188_p5 }
  0x33   :  { %2198 = shalt.err (!%p2195_p9)
}
  0x34   :  { %54 = dma.hbm_to_vmem [thread:$0]  %s2869_s3, 3072, %s49_s29, [#allocation8], %s2252_s11, %s2252_s11, %s2253_s12  }
  0x35   :  { %2243 = dma.done.wait [#allocation5], 512  }
  0x36   :  { %2244 = vsyncadd [#allocation5], 4294966784 }
  0x37   :  { %2245 = dma.done.wait [#allocation8], 6144  }
  0x38   :  { %2246 = vsyncadd [#allocation8], 4294961152  ;;  %v2874_v0 = vmov 0   ;;  %v1961_v1 = vld [vmem:[#allocation7 + $0x4] ss:$12 sps:$4 sm:$0xff]   ;;  %v1996_v31 = vld [vmem:[#allocation4 + $0x8] sm:$0xff]   ;;  %v116_v60 = vlaneseq }
  0x39   :  { %315 = vmatprep.mubr.bf16.mxu0 %v2874_v0  ;;  %1959 = vset.pattern.permute.xlu0 %v2874_v0  ;;  %v1963_v2 = vld [vmem:[#allocation7] ss:$12 sps:$4 sm:$0xff]   ;;  %v1964_v3 = vld [vmem:[#allocation7 + $0x1c] ss:$12 sps:$4 sm:$0xff]   ;;  %v1966_v4 = vld [vmem:[#allocation7 + $0x18] ss:$12 sps:$4 sm:$0xff]  }
  0x3a   :  { %1960 = vset.pattern.permute.xlu1 %v2874_v0  ;;  %283 = vmatprep.subr.bf16.mxu0 %v1961_v1  ;;  %v1967_v5 = vld [vmem:[#allocation7 + $0x34] ss:$12 sps:$4 sm:$0xff]   ;;  %v1969_v6 = vld [vmem:[#allocation7 + $0x30] ss:$12 sps:$4 sm:$0xff]   ;;  %v1970_v7 = vld [vmem:[#allocation7 + $0x4c] ss:$12 sps:$4 sm:$0xff]  }
  0x3b   :  { %284 = vmatpush1.bf16.msra.mxu0 %v1963_v2  ;;  %v1981_v8 = vld [vmem:[#allocation7 + $0x8] ss:$12 sps:$4 sm:$0xff]   ;;  %v1973_v10 = vld [vmem:[#allocation7 + $0x64] ss:$12 sps:$4 sm:$0xff]   ;;  %v1985_v11 = vld [vmem:[#allocation7 + $0x20] ss:$12 sps:$4 sm:$0xff]  }
  0x3c   :  { %285 = vmatprep.subr.bf16.mxu0 %v1964_v3  ;;  %v1972_v9 = vld [vmem:[#allocation7 + $0x48] ss:$12 sps:$4 sm:$0xff]   ;;  %1762 = vmatprep.subr.bf16.mxu1 %v1981_v8  ;;  %v1987_v12 = vld [vmem:[#allocation4] sm:$0xff]   ;;  %v1992_v16 = vld [vmem:[#allocation7 + $0x50] ss:$12 sps:$4 sm:$0xff]   ;;  %v2876_v34 = vmov 0.0  }
  0x3d   :  { %1763 = vmatpush3.bf16.msra.mxu1 %v1981_v8  ;;  %v1988_v13 = vld [vmem:[#allocation7 + $0x38] ss:$12 sps:$4 sm:$0xff]   ;;  %v1975_v14 = vld [vmem:[#allocation7 + $0x60] ss:$12 sps:$4 sm:$0xff]   ;;  %1778 = vmatprep.mubr.bf16.mxu1 %v1987_v12  ;;  %v1976_v15 = vld [vmem:[#allocation7 + $0x7c] ss:$12 sps:$4 sm:$0xff]  }
  0x3e   :  { %1764 = vmatprep.subr.bf16.mxu1 %v1985_v11  ;;  %v1978_v17 = vld [vmem:[#allocation7 + $0x78] ss:$12 sps:$4 sm:$0xff]   ;;  %v1979_v18 = vld [vmem:[#allocation7 + $0x94] ss:$12 sps:$4 sm:$0xff]   ;;  %v1982_v20 = vld [vmem:[#allocation7 + $0x90] ss:$12 sps:$4 sm:$0xff]  }
  0x3f   :  { %286 = vmatpush1.bf16.msra.mxu0 %v1966_v4  ;;  %v1997_v19 = vld [vmem:[#allocation7 + $0x68] ss:$12 sps:$4 sm:$0xff]   ;;  %v1983_v21 = vld [vmem:[#allocation7 + $0xac] ss:$12 sps:$4 sm:$0xff]   ;;  %v2352_v24 = vld [vmem:[#allocation9 + $0x4] ss:$12 sps:$4 sm:$0xff]  }
  0x40   :  { %287 = vmatprep.subr.bf16.mxu0 %v1967_v5  ;;  %v2001_v22 = vld [vmem:[#allocation7 + $0x80] ss:$12 sps:$4 sm:$0xff]   ;;  %v1986_v23 = vld [vmem:[#allocation7 + $0xa8] ss:$12 sps:$4 sm:$0xff]   ;;  %v2006_v25 = vld [vmem:[#allocation7 + $0x98] ss:$12 sps:$4 sm:$0xff]  }
  0x41   :  { %1765 = vmatpush3.bf16.msra.mxu1 %v1985_v11  ;;  %v2354_v26 = vld [vmem:[#allocation9] ss:$12 sps:$4 sm:$0xff]   ;;  %v2357_v27 = vld [vmem:[#allocation9 + $0x1c] ss:$12 sps:$4 sm:$0xff]   ;;  %v2360_v29 = vld [vmem:[#allocation9 + $0x18] ss:$12 sps:$4 sm:$0xff]  }
  0x42   :  { %1766 = vmatprep.subr.bf16.mxu1 %v1988_v13  ;;  %v2010_v28 = vld [vmem:[#allocation7 + $0xb0] ss:$12 sps:$4 sm:$0xff]   ;;  %v2364_v30 = vld [vmem:[#allocation9 + $0x34] ss:$12 sps:$4 sm:$0xff]   ;;  %v2370_v33 = vld [vmem:[#allocation9 + $0x4c] ss:$12 sps:$4 sm:$0xff]  }
  0x43   :  { %288 = vmatpush1.bf16.msra.mxu0 %v1969_v6  ;;  %v2367_v32 = vld [vmem:[#allocation9 + $0x30] ss:$12 sps:$4 sm:$0xff]   ;;  %v2373_v35 = vld [vmem:[#allocation9 + $0x8] ss:$12 sps:$4 sm:$0xff]   ;;  %v2378_v36 = vld [vmem:[%s2867_s1] sm:$0xff]  ;;  %vm2260_vm2 = vmmov 0  }
  0x44   :  { %289 = vmatprep.subr.bf16.mxu0 %v1970_v7  ;;  %vm1650_vm0 = vcmp.gt.s32.totalorder %v2378_v36, 0  ;;  %v2382_v37 = vld [vmem:[#allocation9 + $0x48] ss:$12 sps:$4 sm:$0xff]   ;;  %v2387_v40 = vld [vmem:[#allocation9 + $0x64] ss:$12 sps:$4 sm:$0xff]   ;;  %vm1653_vm1 = vcmp.gt.s32.totalorder %v2378_v36, 1 }
  0x45   :  { %1767 = vmatpush3.bf16.msra.mxu1 %v1988_v13  ;;  %v2005_v38 = vld [vmem:[#allocation4 + $0x10] sm:$0xff]   ;;  %v723_v39 = vsel %vm1650_vm0, 1, %v2874_v0  ;;  %v2390_v41 = vld [vmem:[#allocation9 + $0x20] ss:$12 sps:$4 sm:$0xff]   ;;  %v2397_v43 = vld [vmem:[#allocation9 + $0x7c] ss:$12 sps:$4 sm:$0xff]  }
  0x46   :  { %1768 = vmatprep.subr.bf16.mxu1 %v1992_v16  ;;  %725 = vperm.xlu0 %1959, %v723_v39   ;;  %v2394_v42 = vld [vmem:[#allocation9 + $0x60] ss:$12 sps:$4 sm:$0xff]   ;;  %v2401_v44 = vld [vmem:[#allocation9 + $0x38] ss:$12 sps:$4 sm:$0xff]   ;;  %v841_v47 = vsel %vm1653_vm1, 1, %v2874_v0  ;;  %vm1662_vm3 = vcmp.gt.s32.totalorder %v2378_v36, 4 }
  0x47   :  { %290 = vmatpush1.bf16.msra.mxu0 %v1972_v9  ;;  %v2014_v45 = vld [vmem:[#allocation4 + $0x18] sm:$0xff]   ;;  %v2410_v48 = vld [vmem:[#allocation9 + $0x94] ss:$12 sps:$4 sm:$0xff]   ;;  %v1195_v53 = vsel %vm1662_vm3, 1, %v2874_v0  ;;  %vm1668_vm4 = vcmp.gt.s32.totalorder %v2378_v36, 6  ;;  %v2261_v58 = vmov 0.0|0.0  }
  0x48   :  { %291 = vmatprep.subr.bf16.mxu0 %v1973_v10  ;;  %v2405_v46 = vld [vmem:[#allocation9 + $0x78] ss:$12 sps:$4 sm:$0xff]   ;;  %v2413_v49 = vld [vmem:[#allocation9 + $0x50] ss:$12 sps:$4 sm:$0xff]   ;;  %v2426_v52 = vld [vmem:[#allocation9 + $0x68] ss:$12 sps:$4 sm:$0xff]  }
  0x49   :  { %1769 = vmatpush3.bf16.msra.mxu1 %v1992_v16  ;;  %v2420_v50 = vld [vmem:[#allocation9 + $0x90] ss:$12 sps:$4 sm:$0xff]   ;;  %v2423_v51 = vld [vmem:[#allocation9 + $0xac] ss:$12 sps:$4 sm:$0xff]   ;;  %v2432_v54 = vld [vmem:[#allocation9 + $0xa8] ss:$12 sps:$4 sm:$0xff]  }
  0x4a   :  { %1770 = vmatprep.subr.bf16.mxu1 %v1997_v19  ;;  %843 = vperm.xlu0 %1959, %v841_v47   ;;  %v2437_v55 = vld [vmem:[#allocation9 + $0x80] ss:$12 sps:$4 sm:$0xff]   ;;  %v1431_v56 = vsel %vm1668_vm4, 1, %v2874_v0  ;;  %v2444_v57 = vld [vmem:[#allocation9 + $0x98] ss:$12 sps:$4 sm:$0xff]   ;;  %v117_v61 = vshrl.u32 %v116_v60, 7 }
  0x4b   :  { %292 = vmatpush1.bf16.msra.mxu0 %v1975_v14  ;;  %v2451_v59 = vld [vmem:[#allocation9 + $0xb0] ss:$12 sps:$4 sm:$0xff]   ;;  %v114_v63 = vld [vmem:[%s2870_s4] sm:$0x7]  ;;  %vm1656_vm7 = vcmp.gt.s32.totalorder %v2378_v36, 2  ;;  %vm1659_vm8 = vcmp.gt.s32.totalorder %v2378_v36, 3 }
  0x4c   :  { %293 = vmatprep.subr.bf16.mxu0 %v1976_v15  ;;  %v118_v62 = vsub.s32 0, %v117_v61  ;;  %v122_v1 = vsub.s32 1, %v117_v61  ;;  %v126_v9 = vsub.s32 2, %v117_v61  ;;  %vm1665_vm9 = vcmp.gt.s32.totalorder %v2378_v36, 5  ;;  %s2263_s20 = smov [#allocation10]  }
  0x4d   :  { %1771 = vmatpush3.bf16.msra.mxu1 %v1997_v19  ;;  %vm1671_vm10 = vcmp.gt.s32.totalorder %v2378_v36, 7  ;;  %s1568_s21 = sshll.u32 %s2263_s20, 4  ;;  %s2832_s21 = int_to_ptr.vmem [resolvable:$true] %s1568_s21 }
  0x4e   :  { %1772 = vmatprep.subr.bf16.mxu1 %v2001_v22  ;;  %1197 = vperm.xlu0 %1959, %v1195_v53   ;;  %v119_v3 = vrot.slane %v114_v63, %v118_v62  ;;  %v123_v5 = vrot.slane %v114_v63, %v122_v1  ;;  %v2495_v11 = vrot.slane %v114_v63, %v126_v9 }
  0x4f   :  { %294 = vmatpush1.bf16.msra.mxu0 %v1978_v17 }
  0x50   :  { %295 = vmatprep.subr.bf16.mxu0 %v1979_v18 }
  0x51   :  { %1773 = vmatpush3.bf16.msra.mxu1 %v2001_v22 }
  0x52   :  { %1774 = vmatprep.subr.bf16.mxu1 %v2006_v25  ;;  %1433 = vperm.xlu0 %1959, %v1431_v56  }
  0x53   :  { %296 = vmatpush1.bf16.msra.mxu0 %v1982_v20 }
  0x54   :  { %297 = vmatprep.subr.bf16.mxu0 %v1983_v21 }
  0x55   :  { %1775 = vmatpush3.bf16.msra.mxu1 %v2006_v25 }
  0x56   :  { %1776 = vmatprep.subr.bf16.mxu1 %v2010_v28 }
  0x57   :  { %298 = vmatpush1.bf16.msra.mxu0 %v1986_v23 }
  0x58   :  { %610 = vmatprep.subr.bf16.mxu0 %v2352_v24 }
  0x59   :  { %1777 = vmatpush3.bf16.msra.mxu1 %v2010_v28 }
  0x5a   :  { %316 = vmatmul.mubr.bf16.vlgmr.msra.gmra.mrb[0].mxu0 %v1987_v12  ;;  %1786 = vmatprep.subr.bf16.mxu1 %v2876_v34 }
  0x5b   :  { %611 = vmatpush1.bf16.msra.mxu0 %v2354_v26  ;;  %325 = vmatprep.mubr.bf16.mxu0 %v2874_v0 }
  0x5c   :  { %612 = vmatprep.subr.bf16.mxu0 %v2357_v27  ;;  %1779 = vmatmul.mubr.bf16.vlgmr.msra.gmra.mrb[0].mxu1 %v1996_v31 }
  0x5d   :  { %1787 = vmatpush3.bf16.msra.mxu1 %v2373_v35  ;;  %1782 = vmatprep.mubr.bf16.mxu1 %v2005_v38 }
  0x5e   :  { %1788 = vmatprep.subr.bf16.mxu1 %v2876_v34 }
  0x5f   :  { %613 = vmatpush1.bf16.msra.mxu0 %v2360_v29 }
  0x60   :  { %614 = vmatprep.subr.bf16.mxu0 %v2364_v30 }
  0x61   :  { %1789 = vmatpush3.bf16.msra.mxu1 %v2390_v41 }
  0x62   :  { %326 = vmatmul.mubr.bf16.gmra.mrb[4].mxu0 %v1996_v31  ;;  %1790 = vmatprep.subr.bf16.mxu1 %v2876_v34 }
  0x63   :  { %615 = vmatpush1.bf16.msra.mxu0 %v2367_v32  ;;  %335 = vmatprep.mubr.bf16.mxu0 %v2874_v0 }
  0x64   :  { %616 = vmatprep.subr.bf16.mxu0 %v2370_v33  ;;  %1783 = vmatmul.mubr.bf16.gmra.mrb[4].mxu1 %v2014_v45 }
  0x65   :  { %1791 = vmatpush3.bf16.msra.mxu1 %v2401_v44  ;;  %1802 = vmatprep.mubr.msk.bf16.mxu1 %vm2260_vm2, %v2876_v34 }
  0x66   :  { %1792 = vmatprep.subr.bf16.mxu1 %v2876_v34 }
  0x67   :  { %617 = vmatpush1.bf16.msra.mxu0 %v2382_v37 }
  0x68   :  { %618 = vmatprep.subr.bf16.mxu0 %v2387_v40 }
  0x69   :  { %1793 = vmatpush3.bf16.msra.mxu1 %v2413_v49 }
  0x6a   :  { %336 = vmatmul.mubr.bf16.gmra.mrb[8].mxu0 %v2005_v38  ;;  %1794 = vmatprep.subr.bf16.mxu1 %v2876_v34 }
  0x6b   :  { %619 = vmatpush1.bf16.msra.mxu0 %v2394_v42  ;;  %345 = vmatprep.mubr.bf16.mxu0 %v2874_v0 }
  0x6c   :  { %620 = vmatprep.subr.bf16.mxu0 %v2397_v43 }
  0x6d   :  { %1795 = vmatpush3.bf16.msra.mxu1 %v2426_v52 }
  0x6e   :  { %1796 = vmatprep.subr.bf16.mxu1 %v2876_v34 }
  0x6f   :  { %621 = vmatpush1.bf16.msra.mxu0 %v2405_v46 }
  0x70   :  { %622 = vmatprep.subr.bf16.mxu0 %v2410_v48 }
  0x71   :  { %1797 = vmatpush3.bf16.msra.mxu1 %v2437_v55 }
  0x72   :  { %346 = vmatmul.mubr.bf16.gmra.mrb[12].mxu0 %v2014_v45  ;;  %1798 = vmatprep.subr.bf16.mxu1 %v2876_v34 }
  0x73   :  { %623 = vmatpush1.bf16.msra.mxu0 %v2420_v50  ;;  %642 = vmatprep.mubr.bf16.mxu0 %v2874_v0 }
  0x74   :  { %624 = vmatprep.subr.bf16.mxu0 %v2423_v51 }
  0x75   :  { %1799 = vmatpush3.bf16.msra.mxu1 %v2444_v57 }
  0x76   :  { %1800 = vmatprep.subr.bf16.mxu1 %v2876_v34 }
  0x77   :  { %625 = vmatpush1.bf16.msra.mxu0 %v2432_v54 }
  0x78   :  { %734 = vmatprep.subr.bf16.mxu0 %v2352_v24 }
  0x79   :  { %1801 = vmatpush3.bf16.msra.mxu1 %v2451_v59 }
  0x7a   :  { %643 = vmatmul.mubr.bf16.vlgmr.msra.gmra.mrb[16].mxu0 %v2261_v58  ;;  %1806 = vmatprep.subr.bf16.mxu1 %v2876_v34 }
  0x7b   :  { %735 = vmatpush1.bf16.msra.mxu0 %v2354_v26  ;;  %766 = vmatprep.mubr.bf16.mxu0 %v2874_v0 }
  0x7c   :  { %736 = vmatprep.subr.bf16.mxu0 %v2357_v27  ;;  %1803 = vmatmul.mubr.bf16.vlgmr.msra.gmra.mrb[8].mxu1 %v2261_v58 }
  0x7d   :  { %1807 = vmatpush3.bf16.msra.mxu1 %v2373_v35  ;;  %1822 = vmatprep.mubr.msk.bf16.mxu1 %vm2260_vm2, %v2876_v34 }
  0x7e   :  { %1808 = vmatprep.subr.bf16.mxu1 %v2876_v34 }
  0x7f   :  { %737 = vmatpush1.bf16.msra.mxu0 %v2360_v29 }
  0x80   :  { %738 = vmatprep.subr.bf16.mxu0 %v2364_v30 }
  0x81   :  { %1809 = vmatpush3.bf16.msra.mxu1 %v2390_v41 }
  0x82   :  { %1810 = vmatprep.subr.bf16.mxu1 %v2876_v34 }
  0x83   :  { %739 = vmatpush1.bf16.msra.mxu0 %v2367_v32 }
  0x84   :  { %740 = vmatprep.subr.bf16.mxu0 %v2370_v33 }
  0x85   :  { %1811 = vmatpush3.bf16.msra.mxu1 %v2401_v44 }
  0x86   :  { %1812 = vmatprep.subr.bf16.mxu1 %v2876_v34 }
  0x87   :  { %741 = vmatpush1.bf16.msra.mxu0 %v2382_v37 }
  0x88   :  { %742 = vmatprep.subr.bf16.mxu0 %v2387_v40 }
  0x89   :  { %1813 = vmatpush3.bf16.msra.mxu1 %v2413_v49 }
  0x8a   :  { %1814 = vmatprep.subr.bf16.mxu1 %v2876_v34 }
  0x8b   :  { %743 = vmatpush1.bf16.msra.mxu0 %v2394_v42 }
  0x8c   :  { %744 = vmatprep.subr.bf16.mxu0 %v2397_v43 }
  0x8d   :  { %1815 = vmatpush3.bf16.msra.mxu1 %v2426_v52 }
  0x8e   :  { %1816 = vmatprep.subr.bf16.mxu1 %v2876_v34 }
  0x8f   :  { %745 = vmatpush1.bf16.msra.mxu0 %v2405_v46 }
  0x90   :  { %746 = vmatprep.subr.bf16.mxu0 %v2410_v48 }
  0x91   :  { %1817 = vmatpush3.bf16.msra.mxu1 %v2437_v55 }
  0x92   :  { %1818 = vmatprep.subr.bf16.mxu1 %v2876_v34 }
  0x93   :  { %747 = vmatpush1.bf16.msra.mxu0 %v2420_v50 }
  0x94   :  { %748 = vmatprep.subr.bf16.mxu0 %v2423_v51 }
  0x95   :  { %1819 = vmatpush3.bf16.msra.mxu1 %v2444_v57 }
  0x96   :  { %1820 = vmatprep.subr.bf16.mxu1 %v2876_v34 }
  0x97   :  { %749 = vmatpush1.bf16.msra.mxu0 %v2432_v54 }
  0x98   :  { %852 = vmatprep.subr.bf16.mxu0 %v2352_v24 }
  0x99   :  { %1821 = vmatpush3.bf16.msra.mxu1 %v2451_v59 }
  0x9a   :  { %1826 = vmatprep.subr.bf16.mxu1 %v2876_v34 }
 0x12d   :  { %v317_v2 = vpop.f32.mrb[0].mxu0 }
 0x12e   :  { %v319_v4 = vpop.f32.mrb[1].mxu0 }
 0x12f   :  { %v321_v6 = vpop.f32.mrb[2].mxu0  ;;  %v1780_v17 = vpop.f32.mrb[0].mxu1 }
 0x130   :  { %v2491_v7 = vadd.f32 %v321_v6, %v119_v3  ;;  %v323_v8 = vpop.f32.mrb[3].mxu0  ;;  %v2504_v20 = vadd.f32 %v1780_v17, %v2495_v11  ;;  %v390_v21 = vpop.f32.mrb[1].mxu1 }
 0x131   :  { %v2493_v10 = vadd.f32 %v323_v8, %v123_v5  ;;  %v1781_v23 = vpop.f32.mrb[2].mxu1 }
 0x132   :  { %v2509_v25 = vadd.f32 %v1781_v23, %v2495_v11  ;;  %v393_v28 = vpop.f32.mrb[3].mxu1 }
 0x133   :  { %v2512_v31 = vadd.f32 %v393_v28, %v2495_v11 }
 0x135   :  { %v327_v12 = vpop.f32.mrb[4].mxu0 }
 0x136   :  { %v2497_v13 = vadd.f32 %v327_v12, %v119_v3  ;;  %v329_v14 = vpop.f32.mrb[5].mxu0 }
 0x137   :  { %v2499_v15 = vadd.f32 %v329_v14, %v123_v5  ;;  %v331_v16 = vpop.f32.mrb[6].mxu0  ;;  %v1784_v56 = vpop.f32.mrb[4].mxu1 }
 0x138   :  { %v2501_v18 = vadd.f32 %v331_v16, %v119_v3  ;;  %v333_v19 = vpop.f32.mrb[7].mxu0  ;;  %v2521_v61 = vadd.f32 %v1784_v56, %v2495_v11  ;;  %v406_v62 = vpop.f32.mrb[5].mxu1  ;;  %v320_v56 = vadd.f32 %v319_v4, %v123_v5 }
 0x139   :  { %v2506_v22 = vadd.f32 %v333_v19, %v123_v5  ;;  %v2526_v1 = vadd.f32 %v406_v62, %v2495_v11  ;;  %v1785_v6 = vpop.f32.mrb[6].mxu1 }
 0x13a   :  { %2878 = vst [vmem:[#allocation17_spill] sm:$0xff] %v2521_v61  ;;  %v2529_v8 = vadd.f32 %v1785_v6, %v2495_v11  ;;  %v409_v9 = vpop.f32.mrb[7].mxu1 }
 0x13b   :  { %v2532_v12 = vadd.f32 %v409_v9, %v2495_v11 }
 0x13c   :  { %2879 = vst [vmem:[#allocation18_spill] sm:$0xff] %v2529_v8 }
 0x13d   :  { %v337_v38 = vpop.f32.mrb[8].mxu0 }
 0x13e   :  { %v2514_v39 = vadd.f32 %v337_v38, %v119_v3  ;;  %v339_v45 = vpop.f32.mrb[9].mxu0 }
 0x13f   :  { %v2516_v47 = vadd.f32 %v339_v45, %v123_v5  ;;  %v341_v53 = vpop.f32.mrb[10].mxu0 }
 0x140   :  { %v2518_v58 = vadd.f32 %v341_v53, %v119_v3  ;;  %v343_v60 = vpop.f32.mrb[11].mxu0  ;;  %v318_v53 = vadd.f32 %v317_v2, %v119_v3  ;;  %v2545_v2 = vld [vmem:[%s2871_s5] ss:$0 sm:$0xff]  ;;  %s2262_s5 = smov [#allocation11]  }
 0x141   :  { %v2523_v63 = vadd.f32 %v343_v60, %v123_v5  ;;  %s1581_s19 = sshll.u32 %s2262_s5, 4  ;;  %s1582_s19 = int_to_ptr.vmem [resolvable:$true] %s1581_s19 }
 0x142   :  { %s2199_s22 = scalar_lea.vmem %s1582_s19, 128  ;;  %p2204_p11 = scmp.lt.s32.totalorder %s1582_s19, %s1582_s19 }
 0x143   :  { %p2200_p10 = scmp.ne.s32.totalorder %s1582_s19, %s2199_s22  ;;  %p2205_p12 = scmp.lt.s32.totalorder %s2199_s22, %s2199_s22 }
 0x145   :  { %v347_v14 = vpop.f32.mrb[12].mxu0  ;;  %p2206_p13 = por %p2205_p12, %p2204_p11 }
 0x146   :  { %v2534_v16 = vadd.f32 %v347_v14, %v119_v3  ;;  %v349_v17 = vpop.f32.mrb[13].mxu0 }
 0x147   :  { %v2536_v19 = vadd.f32 %v349_v17, %v123_v5  ;;  %v351_v23 = vpop.f32.mrb[14].mxu0  ;;  %p2207_p0 = pnand %p2206_p13, %p2200_p10 }
 0x148   :  { %2880 = vst [vmem:[#allocation19_spill] sm:$0xff] %v2534_v16  ;;  %v2538_v28 = vadd.f32 %v351_v23, %v119_v3  ;;  %v353_v38 = vpop.f32.mrb[15].mxu0 }
 0x149   :  { %2881 = vst [vmem:[#allocation20_spill] sm:$0xff] %v2536_v19  ;;  %v2540_v45 = vadd.f32 %v353_v38, %v123_v5 }
 0x14a   :  { %2882 = vst [vmem:[#allocation21_spill] sm:$0xff] %v2538_v28 }
 0x14d   :  { %v644_v60 = vpop.f32.mrb[16].mxu0 }
 0x14e   :  { %v694_v62 = vadd.f32 %v644_v60, %v318_v53  ;;  %v646_v6 = vpop.f32.mrb[17].mxu0 }
 0x14f   :  { %v701_v0 = vadd.f32 %v646_v6, %v320_v56  ;;  %v648_v9 = vpop.f32.mrb[18].mxu0  ;;  %v685_v14 = vpop.f32.mrb[8].mxu1 }
 0x150   :  { %v1647_v34 = vmul.f32 -1.442695, %v694_v62  ;;  %v649_v8 = vpop.f32.mrb[19].mxu0  ;;  %v1804_v61 = vpop.f32.mrb[9].mxu1  ;;  %v714_v3 = vadd.f32 %v2545_v2, %v685_v14 }
 0x151   :  { %v688_v17 = vpop.f32.mrb[10].mxu1  ;;  %v1648_v19 = vmul.f32 -1.442695, %v701_v0 }
 0x152   :  { %2029 = vpow2.f32 %v1647_v34  ;;  %v1805_v16 = vpop.f32.mrb[11].mxu1  ;;  %v391_v34 = vadd.f32 %v390_v21, %v2495_v11  ;;  %v2883_v11 = vmov 0.0   ;;  %v2884_v21 = vmov 0  }
 0x153   :  { %2031 = vpow2.f32 %v1648_v19  ;;  %v959_v9 = vsel %vm1656_vm7, 1, %v2884_v21  ;;  %v1077_v14 = vsel %vm1659_vm8, 1, %v2884_v21  ;;  %v1313_v17 = vsel %vm1665_vm9, 1, %v2884_v21 }
 0x154   :  { %961 = vperm.xlu1 %1960, %v959_v9  }
 0x158   :  { %1079 = vperm.xlu1 %1960, %v1077_v14  }
 0x15c   :  { %v2030_v23 = vpop.eup %2029  ;;  %1315 = vperm.xlu1 %1960, %v1313_v17  }
 0x15d   :  { %v698_v28 = vadd.f32 1.0, %v2030_v23  ;;  %v2032_v4 = vpop.eup %2031  ;;  %v1549_v23 = vsel %vm1671_vm10, 1, %v2884_v21 }
 0x15e   :  { %v705_v61 = vadd.f32 1.0, %v2032_v4 }
 0x15f   :  { %2033 = vrcp.f32 %v698_v28  ;;  %v726_v28 = vpop.permute.xlu0 %725 }
 0x160   :  { %vm727_vm5 = vcmp.eq.s32.totalorder %v726_v28, 1  ;;  %1551 = vperm.xlu1 %1960, %v1549_v23  }
 0x161   :  { %vm1672_vm6 = vmpackc.low %vm727_vm5, %vm727_vm5 }
 0x169   :  { %v2034_v5 = vpop.eup %2033 }
 0x16a   :  { %v715_v8 = vmul.f32 %v2034_v5, %v714_v3 }
 0x16c   :  { %v716_v38 = vadd.f32 %v715_v8, %v391_v34 }
 0x16e   :  { %2035 = vtanh.f32 %v716_v38 }
 0x16f   :  { %2037 = vrcp.f32 %v705_v61 }
 0x178   :  { %v2036_v0 = vpop.eup %2035 }
 0x179   :  { %v718_v16 = vsub.f32 0.0, %v2036_v0  ;;  %v2038_v19 = vpop.eup %2037 }
 0x17b   :  { %v719_v53 = vmul.f32 %v2038_v19, %v718_v16 }
 0x17d   :  { %v720_v56 = vadd.f32 %v2036_v0, %v719_v53 }
 0x17f   :  { %v2549_v60 = vsel %vm727_vm5, %v720_v56, 0.0  ;;  %v1673_v62 = vpack.c.bf16 %v720_v56, %v720_v56 }
 0x180   :  { %v730_v6 = vpack.c.bf16 %v2549_v60, %v2549_v60 }
 0x181   :  { %1674 = vmatmul.mubr.msk.bf16.vlgmr.msra.gmra.mrb[20].mxu0 %vm1672_vm6, %v1673_v62  ;;  %1823 = vmatmul.mubr.msk.bf16.vlgmr.msra.gmra.mrb[12].mxu1 %vm1672_vm6, %v1673_v62 }
 0x182   :  { %731 = vst [vmem:[#allocation10] sm:$0xf] %v730_v6  ;;  %853 = vmatpush1.bf16.msra.mxu0 %v2354_v26  ;;  %1827 = vmatpush3.bf16.msra.mxu1 %v2373_v35 }
 0x183   :  { %854 = vmatprep.subr.bf16.mxu0 %v2357_v27  ;;  %1828 = vmatprep.subr.bf16.mxu1 %v2883_v11 }
 0x184   :  { %884 = vmatprep.mubr.bf16.mxu0 %v2884_v21  ;;  %1842 = vmatprep.mubr.msk.bf16.mxu1 %vm2260_vm2, %v2883_v11 }
 0x186   :  { %855 = vmatpush1.bf16.msra.mxu0 %v2360_v29  ;;  %1829 = vmatpush3.bf16.msra.mxu1 %v2390_v41 }
 0x187   :  { %856 = vmatprep.subr.bf16.mxu0 %v2364_v30  ;;  %1830 = vmatprep.subr.bf16.mxu1 %v2883_v11 }
 0x18a   :  { %857 = vmatpush1.bf16.msra.mxu0 %v2367_v32  ;;  %1831 = vmatpush3.bf16.msra.mxu1 %v2401_v44 }
 0x18b   :  { %858 = vmatprep.subr.bf16.mxu0 %v2370_v33  ;;  %1832 = vmatprep.subr.bf16.mxu1 %v2883_v11 }
 0x18e   :  { %859 = vmatpush1.bf16.msra.mxu0 %v2382_v37  ;;  %1833 = vmatpush3.bf16.msra.mxu1 %v2413_v49 }
 0x18f   :  { %860 = vmatprep.subr.bf16.mxu0 %v2387_v40  ;;  %1834 = vmatprep.subr.bf16.mxu1 %v2883_v11 }
 0x192   :  { %861 = vmatpush1.bf16.msra.mxu0 %v2394_v42  ;;  %1835 = vmatpush3.bf16.msra.mxu1 %v2426_v52 }
 0x193   :  { %862 = vmatprep.subr.bf16.mxu0 %v2397_v43  ;;  %1836 = vmatprep.subr.bf16.mxu1 %v2883_v11 }
 0x196   :  { %863 = vmatpush1.bf16.msra.mxu0 %v2405_v46  ;;  %1837 = vmatpush3.bf16.msra.mxu1 %v2437_v55 }
 0x197   :  { %864 = vmatprep.subr.bf16.mxu0 %v2410_v48  ;;  %1838 = vmatprep.subr.bf16.mxu1 %v2883_v11 }
 0x19a   :  { %865 = vmatpush1.bf16.msra.mxu0 %v2420_v50  ;;  %1839 = vmatpush3.bf16.msra.mxu1 %v2444_v57 }
 0x19b   :  { %866 = vmatprep.subr.bf16.mxu0 %v2423_v51  ;;  %1840 = vmatprep.subr.bf16.mxu1 %v2883_v11 }
 0x19e   :  { %867 = vmatpush1.bf16.msra.mxu0 %v2432_v54  ;;  %1841 = vmatpush3.bf16.msra.mxu1 %v2451_v59 }
 0x19f   :  { %970 = vmatprep.subr.bf16.mxu0 %v2352_v24  ;;  %1846 = vmatprep.subr.bf16.mxu1 %v2883_v11 }
 0x254   :  { %v768_v3 = vpop.f32.mrb[20].mxu0  ;;  %v809_v4 = vpop.f32.mrb[12].mxu1 }
 0x255   :  { %v818_v5 = vadd.f32 %v768_v3, %v2491_v7  ;;  %v770_v34 = vpop.f32.mrb[21].mxu0  ;;  %v1824_v8 = vpop.f32.mrb[13].mxu1  ;;  %v832_v6 = vadd.f32 %v2545_v2, %v809_v4 }
 0x256   :  { %v825_v61 = vadd.f32 %v770_v34, %v2493_v10  ;;  %v772_v38 = vpop.f32.mrb[22].mxu0  ;;  %v812_v0 = vpop.f32.mrb[14].mxu1 }
 0x257   :  { %v1651_v16 = vmul.f32 -1.442695, %v818_v5  ;;  %v773_v19 = vpop.f32.mrb[23].mxu0  ;;  %v1825_v28 = vpop.f32.mrb[15].mxu1 }
 0x258   :  { %v1652_v53 = vmul.f32 -1.442695, %v825_v61  ;;  %v844_v34 = vpop.permute.xlu0 %843 }
 0x259   :  { %2039 = vpow2.f32 %v1651_v16  ;;  %vm845_vm11 = vcmp.eq.s32.totalorder %v844_v34, 1 }
 0x25a   :  { %2041 = vpow2.f32 %v1652_v53 }
 0x263   :  { %v2040_v36 = vpop.eup %2039 }
 0x264   :  { %v822_v56 = vadd.f32 1.0, %v2040_v36  ;;  %v2042_v62 = vpop.eup %2041 }
 0x265   :  { %v829_v17 = vadd.f32 1.0, %v2042_v62 }
 0x266   :  { %2043 = vrcp.f32 %v822_v56 }
 0x270   :  { %v2044_v9 = vpop.eup %2043 }
 0x271   :  { %v833_v7 = vmul.f32 %v2044_v9, %v832_v6 }
 0x273   :  { %v834_v14 = vadd.f32 %v833_v7, %v2512_v31 }
 0x275   :  { %2045 = vtanh.f32 %v834_v14 }
 0x276   :  { %2047 = vrcp.f32 %v829_v17 }
 0x27f   :  { %v2046_v10 = vpop.eup %2045 }
 0x280   :  { %v836_v23 = vsub.f32 %v2549_v60, %v2046_v10  ;;  %v2048_v3 = vpop.eup %2047 }
 0x282   :  { %v837_v5 = vmul.f32 %v2048_v3, %v836_v23 }
 0x284   :  { %v838_v8 = vadd.f32 %v2046_v10, %v837_v5 }
 0x286   :  { %v2602_v61 = vsel %vm845_vm11, %v838_v8, %v2549_v60  ;;  %v847_v38 = vsel %vm845_vm11, %v838_v8, 0.0 }
 0x287   :  { %v848_v4 = vpack.c.bf16 %v847_v38, %v847_v38  ;;  %v851_v0 = vpack.c.bf16 %v2602_v61, %v2602_v61 }
 0x289   :  { %849 = vst [vmem:[#allocation10 + $0x4] sm:$0xf] %v848_v4  ;;  %885 = vmatmul.mubr.bf16.vlgmr.msra.gmra.mrb[24].mxu0 %v851_v0  ;;  %1843 = vmatmul.mubr.bf16.vlgmr.msra.gmra.mrb[16].mxu1 %v851_v0  ;;  %v962_v4 = vpop.permute.xlu1 %961 }
 0x28a   :  { %971 = vmatpush1.bf16.msra.mxu0 %v2354_v26  ;;  %1847 = vmatpush3.bf16.msra.mxu1 %v2373_v35  ;;  %vm963_vm12 = vcmp.eq.s32.totalorder %v962_v4, 1 }
 0x28b   :  { %972 = vmatprep.subr.bf16.mxu0 %v2357_v27  ;;  %1848 = vmatprep.subr.bf16.mxu1 %v2883_v11 }
 0x28c   :  { %1002 = vmatprep.mubr.bf16.mxu0 %v2884_v21  ;;  %1862 = vmatprep.mubr.msk.bf16.mxu1 %vm2260_vm2, %v2883_v11 }
 0x28e   :  { %973 = vmatpush1.bf16.msra.mxu0 %v2360_v29  ;;  %1849 = vmatpush3.bf16.msra.mxu1 %v2390_v41 }
 0x28f   :  { %974 = vmatprep.subr.bf16.mxu0 %v2364_v30  ;;  %1850 = vmatprep.subr.bf16.mxu1 %v2883_v11 }
 0x292   :  { %975 = vmatpush1.bf16.msra.mxu0 %v2367_v32  ;;  %1851 = vmatpush3.bf16.msra.mxu1 %v2401_v44 }
 0x293   :  { %976 = vmatprep.subr.bf16.mxu0 %v2370_v33  ;;  %1852 = vmatprep.subr.bf16.mxu1 %v2883_v11 }
 0x296   :  { %977 = vmatpush1.bf16.msra.mxu0 %v2382_v37  ;;  %1853 = vmatpush3.bf16.msra.mxu1 %v2413_v49 }
 0x297   :  { %978 = vmatprep.subr.bf16.mxu0 %v2387_v40  ;;  %1854 = vmatprep.subr.bf16.mxu1 %v2883_v11 }
 0x29a   :  { %979 = vmatpush1.bf16.msra.mxu0 %v2394_v42  ;;  %1855 = vmatpush3.bf16.msra.mxu1 %v2426_v52 }
 0x29b   :  { %980 = vmatprep.subr.bf16.mxu0 %v2397_v43  ;;  %1856 = vmatprep.subr.bf16.mxu1 %v2883_v11 }
 0x29e   :  { %981 = vmatpush1.bf16.msra.mxu0 %v2405_v46  ;;  %1857 = vmatpush3.bf16.msra.mxu1 %v2437_v55 }
 0x29f   :  { %982 = vmatprep.subr.bf16.mxu0 %v2410_v48  ;;  %1858 = vmatprep.subr.bf16.mxu1 %v2883_v11 }
 0x2a2   :  { %983 = vmatpush1.bf16.msra.mxu0 %v2420_v50  ;;  %1859 = vmatpush3.bf16.msra.mxu1 %v2444_v57 }
 0x2a3   :  { %984 = vmatprep.subr.bf16.mxu0 %v2423_v51  ;;  %1860 = vmatprep.subr.bf16.mxu1 %v2883_v11 }
 0x2a6   :  { %985 = vmatpush1.bf16.msra.mxu0 %v2432_v54  ;;  %1861 = vmatpush3.bf16.msra.mxu1 %v2451_v59 }
 0x2a7   :  { %1088 = vmatprep.subr.bf16.mxu0 %v2352_v24  ;;  %1866 = vmatprep.subr.bf16.mxu1 %v2883_v11 }
 0x35c   :  { %v886_v31 = vpop.f32.mrb[24].mxu0  ;;  %v927_v60 = vpop.f32.mrb[16].mxu1 }
 0x35d   :  { %v936_v16 = vadd.f32 %v886_v31, %v2497_v13  ;;  %v888_v19 = vpop.f32.mrb[25].mxu0  ;;  %v1844_v28 = vpop.f32.mrb[17].mxu1  ;;  %v950_v23 = vadd.f32 %v2545_v2, %v927_v60 }
 0x35e   :  { %v943_v53 = vadd.f32 %v888_v19, %v2499_v15  ;;  %v890_v36 = vpop.f32.mrb[26].mxu0  ;;  %v930_v56 = vpop.f32.mrb[18].mxu1 }
 0x35f   :  { %v1654_v62 = vmul.f32 -1.442695, %v936_v16  ;;  %v891_v6 = vpop.f32.mrb[27].mxu0  ;;  %v1845_v9 = vpop.f32.mrb[19].mxu1 }
 0x360   :  { %v1655_v7 = vmul.f32 -1.442695, %v943_v53 }
 0x361   :  { %2049 = vpow2.f32 %v1654_v62 }
 0x362   :  { %2051 = vpow2.f32 %v1655_v7 }
 0x36b   :  { %v2050_v14 = vpop.eup %2049 }
 0x36c   :  { %v940_v17 = vadd.f32 1.0, %v2050_v14  ;;  %v2052_v10 = vpop.eup %2051 }
 0x36d   :  { %v947_v34 = vadd.f32 1.0, %v2052_v10 }
 0x36e   :  { %2053 = vrcp.f32 %v940_v17 }
 0x378   :  { %v2054_v3 = vpop.eup %2053 }
 0x379   :  { %v951_v13 = vmul.f32 %v2054_v3, %v950_v23 }
 0x37b   :  { %v952_v5 = vadd.f32 %v951_v13, %v2504_v20 }
 0x37d   :  { %2055 = vtanh.f32 %v952_v5 }
 0x37e   :  { %2057 = vrcp.f32 %v947_v34 }
 0x387   :  { %v2056_v15 = vpop.eup %2055 }
 0x388   :  { %v954_v8 = vsub.f32 %v2602_v61, %v2056_v15  ;;  %v2058_v38 = vpop.eup %2057 }
 0x38a   :  { %v955_v0 = vmul.f32 %v2058_v38, %v954_v8 }
 0x38c   :  { %v956_v31 = vadd.f32 %v2056_v15, %v955_v0  ;;  %v1080_v0 = vpop.permute.xlu1 %1079 }
 0x38d   :  { %vm1081_vm13 = vcmp.eq.s32.totalorder %v1080_v0, 1  ;;  %v2770_v0 = vld [vmem:[#allocation9 + $0x48] ss:$12 sps:$4 sm:$0xff]  }
 0x38e   :  { %v2647_v16 = vsel %vm963_vm12, %v956_v31, %v2602_v61  ;;  %v965_v19 = vsel %vm963_vm12, %v956_v31, 0.0 }
 0x38f   :  { %v966_v60 = vpack.c.bf16 %v965_v19, %v965_v19  ;;  %v969_v28 = vpack.c.bf16 %v2647_v16, %v2647_v16 }
 0x391   :  { %967 = vst [vmem:[#allocation10 + $0x8] sm:$0xf] %v966_v60  ;;  %1003 = vmatmul.mubr.bf16.vlgmr.msra.gmra.mrb[28].mxu0 %v969_v28  ;;  %1863 = vmatmul.mubr.bf16.vlgmr.msra.gmra.mrb[20].mxu1 %v969_v28 }
 0x392   :  { %1089 = vmatpush1.bf16.msra.mxu0 %v2354_v26  ;;  %1867 = vmatpush3.bf16.msra.mxu1 %v2373_v35 }
 0x393   :  { %1090 = vmatprep.subr.bf16.mxu0 %v2357_v27  ;;  %1868 = vmatprep.subr.bf16.mxu1 %v2883_v11 }
 0x394   :  { %1120 = vmatprep.mubr.bf16.mxu0 %v2884_v21  ;;  %1882 = vmatprep.mubr.msk.bf16.mxu1 %vm2260_vm2, %v2883_v11 }
 0x396   :  { %1091 = vmatpush1.bf16.msra.mxu0 %v2360_v29  ;;  %1869 = vmatpush3.bf16.msra.mxu1 %v2390_v41 }
 0x397   :  { %1092 = vmatprep.subr.bf16.mxu0 %v2364_v30  ;;  %1870 = vmatprep.subr.bf16.mxu1 %v2883_v11 }
 0x39a   :  { %1093 = vmatpush1.bf16.msra.mxu0 %v2367_v32  ;;  %1871 = vmatpush3.bf16.msra.mxu1 %v2401_v44 }
 0x39b   :  { %1094 = vmatprep.subr.bf16.mxu0 %v2370_v33  ;;  %1872 = vmatprep.subr.bf16.mxu1 %v2883_v11 }
 0x39e   :  { %1095 = vmatpush1.bf16.msra.mxu0 %v2382_v37  ;;  %1873 = vmatpush3.bf16.msra.mxu1 %v2413_v49 }
 0x39f   :  { %1096 = vmatprep.subr.bf16.mxu0 %v2387_v40  ;;  %1874 = vmatprep.subr.bf16.mxu1 %v2883_v11 }
 0x3a2   :  { %1097 = vmatpush1.bf16.msra.mxu0 %v2394_v42  ;;  %1875 = vmatpush3.bf16.msra.mxu1 %v2426_v52 }
 0x3a3   :  { %1098 = vmatprep.subr.bf16.mxu0 %v2397_v43  ;;  %1876 = vmatprep.subr.bf16.mxu1 %v2883_v11 }
 0x3a6   :  { %1099 = vmatpush1.bf16.msra.mxu0 %v2405_v46  ;;  %1877 = vmatpush3.bf16.msra.mxu1 %v2437_v55 }
 0x3a7   :  { %1100 = vmatprep.subr.bf16.mxu0 %v2410_v48  ;;  %1878 = vmatprep.subr.bf16.mxu1 %v2883_v11 }
 0x3aa   :  { %1101 = vmatpush1.bf16.msra.mxu0 %v2420_v50  ;;  %1879 = vmatpush3.bf16.msra.mxu1 %v2444_v57 }
 0x3ab   :  { %1102 = vmatprep.subr.bf16.mxu0 %v2423_v51  ;;  %1880 = vmatprep.subr.bf16.mxu1 %v2883_v11 }
 0x3ae   :  { %1103 = vmatpush1.bf16.msra.mxu0 %v2432_v54  ;;  %1881 = vmatpush3.bf16.msra.mxu1 %v2451_v59 }
 0x3af   :  { %1206 = vmatprep.subr.bf16.mxu0 %v2352_v24  ;;  %1886 = vmatprep.subr.bf16.mxu1 %v2883_v11 }
 0x464   :  { %v1004_v20 = vpop.f32.mrb[28].mxu0  ;;  %v1045_v61 = vpop.f32.mrb[20].mxu1 }
 0x465   :  { %v1054_v53 = vadd.f32 %v1004_v20, %v2501_v18  ;;  %v1006_v36 = vpop.f32.mrb[29].mxu0  ;;  %v1864_v56 = vpop.f32.mrb[21].mxu1  ;;  %v1068_v13 = vadd.f32 %v2545_v2, %v1045_v61 }
 0x466   :  { %v1061_v62 = vadd.f32 %v1006_v36, %v2506_v22  ;;  %v1008_v6 = vpop.f32.mrb[30].mxu0  ;;  %v1048_v9 = vpop.f32.mrb[22].mxu1 }
 0x467   :  { %v1657_v7 = vmul.f32 -1.442695, %v1054_v53  ;;  %v1009_v14 = vpop.f32.mrb[31].mxu0  ;;  %v1865_v17 = vpop.f32.mrb[23].mxu1 }
 0x468   :  { %v1658_v10 = vmul.f32 -1.442695, %v1061_v62 }
 0x469   :  { %2059 = vpow2.f32 %v1657_v7 }
 0x46a   :  { %2061 = vpow2.f32 %v1658_v10 }
 0x473   :  { %v2060_v23 = vpop.eup %2059 }
 0x474   :  { %v1058_v3 = vadd.f32 1.0, %v2060_v23  ;;  %v2062_v24 = vpop.eup %2061 }
 0x475   :  { %v1065_v15 = vadd.f32 1.0, %v2062_v24  ;;  %v1198_v24 = vpop.permute.xlu0 %1197 }
 0x476   :  { %2063 = vrcp.f32 %v1058_v3  ;;  %vm1199_vm14 = vcmp.eq.s32.totalorder %v1198_v24, 1  ;;  %v2885_v24 = vld [vmem:[#allocation19_spill] sm:$0xff] }
 0x480   :  { %v2064_v5 = vpop.eup %2063 }
 0x481   :  { %v1069_v18 = vmul.f32 %v2064_v5, %v1068_v13 }
 0x483   :  { %v1070_v34 = vadd.f32 %v1069_v18, %v2509_v25 }
 0x485   :  { %2065 = vtanh.f32 %v1070_v34 }
 0x486   :  { %2067 = vrcp.f32 %v1065_v15 }
 0x48f   :  { %v2066_v22 = vpop.eup %2065 }
 0x490   :  { %v1072_v8 = vsub.f32 %v2647_v16, %v2066_v22  ;;  %v2068_v38 = vpop.eup %2067 }
 0x492   :  { %v1073_v4 = vmul.f32 %v2068_v38, %v1072_v8  ;;  %v2754_v8 = vld [vmem:[#allocation9 + $0x18] ss:$12 sps:$4 sm:$0xff]   ;;  %v2758_v38 = vld [vmem:[#allocation9 + $0x34] ss:$12 sps:$4 sm:$0xff]  }
 0x494   :  { %v1074_v31 = vadd.f32 %v2066_v22, %v1073_v4  ;;  %v2747_v22 = vld [vmem:[#allocation9 + $0x1c] ss:$12 sps:$4 sm:$0xff]   ;;  %v2766_v4 = vld [vmem:[#allocation9 + $0x4c] ss:$12 sps:$4 sm:$0xff]  }
 0x496   :  { %v2692_v19 = vsel %vm1081_vm13, %v1074_v31, %v2647_v16  ;;  %v1083_v60 = vsel %vm1081_vm13, %v1074_v31, 0.0 }
 0x497   :  { %v1084_v28 = vpack.c.bf16 %v1083_v60, %v1083_v60  ;;  %v1087_v20 = vpack.c.bf16 %v2692_v19, %v2692_v19 }
 0x499   :  { %1085 = vst [vmem:[#allocation10 + $0xc] sm:$0xf] %v1084_v28  ;;  %1121 = vmatmul.mubr.bf16.vlgmr.msra.gmra.mrb[32].mxu0 %v1087_v20  ;;  %1883 = vmatmul.mubr.bf16.vlgmr.msra.gmra.mrb[24].mxu1 %v1087_v20 }
 0x49a   :  { %1207 = vmatpush1.bf16.msra.mxu0 %v2354_v26  ;;  %1887 = vmatpush3.bf16.msra.mxu1 %v2373_v35  ;;  %v2729_v26 = vld [vmem:[#allocation9 + $0x4] ss:$12 sps:$4 sm:$0xff]  }
 0x49b   :  { %1208 = vmatprep.subr.bf16.mxu0 %v2357_v27  ;;  %1888 = vmatprep.subr.bf16.mxu1 %v2883_v11 }
 0x49c   :  { %1238 = vmatprep.mubr.bf16.mxu0 %v2884_v21  ;;  %1902 = vmatprep.mubr.msk.bf16.mxu1 %vm2260_vm2, %v2883_v11 }
 0x49e   :  { %1209 = vmatpush1.bf16.msra.mxu0 %v2360_v29  ;;  %1889 = vmatpush3.bf16.msra.mxu1 %v2390_v41 }
 0x49f   :  { %1210 = vmatprep.subr.bf16.mxu0 %v2364_v30  ;;  %1890 = vmatprep.subr.bf16.mxu1 %v2883_v11 }
 0x4a2   :  { %1211 = vmatpush1.bf16.msra.mxu0 %v2367_v32  ;;  %1891 = vmatpush3.bf16.msra.mxu1 %v2401_v44 }
 0x4a3   :  { %1212 = vmatprep.subr.bf16.mxu0 %v2370_v33  ;;  %1892 = vmatprep.subr.bf16.mxu1 %v2883_v11 }
 0x4a6   :  { %1213 = vmatpush1.bf16.msra.mxu0 %v2382_v37  ;;  %1893 = vmatpush3.bf16.msra.mxu1 %v2413_v49 }
 0x4a7   :  { %1214 = vmatprep.subr.bf16.mxu0 %v2387_v40  ;;  %1894 = vmatprep.subr.bf16.mxu1 %v2883_v11 }
 0x4aa   :  { %1215 = vmatpush1.bf16.msra.mxu0 %v2394_v42  ;;  %1895 = vmatpush3.bf16.msra.mxu1 %v2426_v52 }
 0x4ab   :  { %1216 = vmatprep.subr.bf16.mxu0 %v2397_v43  ;;  %1896 = vmatprep.subr.bf16.mxu1 %v2883_v11 }
 0x4ae   :  { %1217 = vmatpush1.bf16.msra.mxu0 %v2405_v46  ;;  %1897 = vmatpush3.bf16.msra.mxu1 %v2437_v55 }
 0x4af   :  { %1218 = vmatprep.subr.bf16.mxu0 %v2410_v48  ;;  %1898 = vmatprep.subr.bf16.mxu1 %v2883_v11 }
 0x4b2   :  { %1219 = vmatpush1.bf16.msra.mxu0 %v2420_v50  ;;  %1899 = vmatpush3.bf16.msra.mxu1 %v2444_v57 }
 0x4b3   :  { %1220 = vmatprep.subr.bf16.mxu0 %v2423_v51  ;;  %1900 = vmatprep.subr.bf16.mxu1 %v2883_v11 }
 0x4b6   :  { %1221 = vmatpush1.bf16.msra.mxu0 %v2432_v54  ;;  %1901 = vmatpush3.bf16.msra.mxu1 %v2451_v59 }
 0x4b7   :  { %1324 = vmatprep.subr.bf16.mxu0 %v2729_v26  ;;  %1906 = vmatprep.subr.bf16.mxu1 %v2883_v11 }
 0x56c   :  { %v1122_v27 = vpop.f32.mrb[32].mxu0  ;;  %v1163_v29 = vpop.f32.mrb[24].mxu1 }
 0x56d   :  { %v1172_v30 = vadd.f32 %v1122_v27, %v2514_v39  ;;  %v1124_v32 = vpop.f32.mrb[33].mxu0  ;;  %v1884_v33 = vpop.f32.mrb[25].mxu1  ;;  %v1186_v9 = vadd.f32 %v2545_v2, %v1163_v29 }
 0x56e   :  { %v1179_v37 = vadd.f32 %v1124_v32, %v2516_v47  ;;  %v1126_v40 = vpop.f32.mrb[34].mxu0  ;;  %v1166_v25 = vpop.f32.mrb[26].mxu1 }
 0x56f   :  { %v1660_v16 = vmul.f32 -1.442695, %v1172_v30  ;;  %v1127_v61 = vpop.f32.mrb[35].mxu0  ;;  %v1885_v53 = vpop.f32.mrb[27].mxu1 }
 0x570   :  { %v1661_v36 = vmul.f32 -1.442695, %v1179_v37  ;;  %v1316_v32 = vpop.permute.xlu1 %1315  ;;  %v2119_v61 = vld [vmem:[#allocation9 + $0x20] ss:$12 sps:$4 sm:$0xff]   ;;  %v2120_v53 = vld [vmem:[#allocation9 + $0x38] ss:$12 sps:$4 sm:$0xff]  }
 0x571   :  { %2069 = vpow2.f32 %v1660_v16  ;;  %vm1317_vm15 = vcmp.eq.s32.totalorder %v1316_v32, 1 }
 0x572   :  { %2071 = vpow2.f32 %v1661_v36  ;;  %v2122_v36 = vld [vmem:[#allocation9 + $0x60] ss:$12 sps:$4 sm:$0xff]  }
 0x57b   :  { %v2070_v56 = vpop.eup %2069 }
 0x57c   :  { %v1176_v62 = vadd.f32 1.0, %v2070_v56  ;;  %v2072_v6 = vpop.eup %2071  ;;  %v2123_v56 = vld [vmem:[#allocation9 + $0x68] ss:$12 sps:$4 sm:$0xff]  }
 0x57d   :  { %v1183_v17 = vadd.f32 1.0, %v2072_v6  ;;  %v2125_v6 = vld [vmem:[#allocation9 + $0x78] ss:$12 sps:$4 sm:$0xff]  }
 0x57e   :  { %2073 = vrcp.f32 %v1176_v62  ;;  %v2124_v62 = vld [vmem:[#allocation9 + $0x7c] ss:$12 sps:$4 sm:$0xff]  }
 0x588   :  { %v2074_v7 = vpop.eup %2073 }
 0x589   :  { %v1187_v39 = vmul.f32 %v2074_v7, %v1186_v9  ;;  %v2126_v9 = vld [vmem:[#allocation9 + $0x80] ss:$12 sps:$4 sm:$0xff]  }
 0x58a   :  { %v2127_v7 = vld [vmem:[#allocation9 + $0x94] ss:$12 sps:$4 sm:$0xff]  }
 0x58b   :  { %v1188_v14 = vadd.f32 %v1187_v39, %v2526_v1  ;;  %v2743_v1 = vld [vmem:[#allocation9] ss:$12 sps:$4 sm:$0xff]   ;;  %v2128_v39 = vld [vmem:[#allocation9 + $0x90] ss:$12 sps:$4 sm:$0xff]  }
 0x58d   :  { %2075 = vtanh.f32 %v1188_v14  ;;  %v2129_v14 = vld [vmem:[#allocation9 + $0x98] ss:$12 sps:$4 sm:$0xff]  }
 0x58e   :  { %2077 = vrcp.f32 %v1183_v17  ;;  %v2130_v17 = vld [vmem:[#allocation9 + $0xac] ss:$12 sps:$4 sm:$0xff]  }
 0x597   :  { %v2076_v47 = vpop.eup %2075 }
 0x598   :  { %v1190_v10 = vsub.f32 %v2692_v19, %v2076_v47  ;;  %v2078_v23 = vpop.eup %2077 }
 0x59a   :  { %v1191_v3 = vmul.f32 %v2078_v23, %v1190_v10  ;;  %v2132_v10 = vld [vmem:[#allocation9 + $0xb0] ss:$12 sps:$4 sm:$0xff]  }
 0x59c   :  { %v1192_v13 = vadd.f32 %v2076_v47, %v1191_v3  ;;  %v2131_v47 = vld [vmem:[#allocation9 + $0xa8] ss:$12 sps:$4 sm:$0xff]  }
 0x59e   :  { %v2739_v5 = vsel %vm1199_vm14, %v1192_v13, %v2692_v19  ;;  %v1201_v18 = vsel %vm1199_vm14, %v1192_v13, 0.0 }
 0x59f   :  { %v1202_v34 = vpack.c.bf16 %v1201_v18, %v1201_v18  ;;  %v1205_v15 = vpack.c.bf16 %v2739_v5, %v2739_v5 }
 0x5a1   :  { %1203 = vst [vmem:[#allocation10 + $0x10] sm:$0xf] %v1202_v34  ;;  %1239 = vmatmul.mubr.bf16.vlgmr.msra.gmra.mrb[36].mxu0 %v1205_v15  ;;  %1903 = vmatmul.mubr.bf16.vlgmr.msra.gmra.mrb[28].mxu1 %v1205_v15  ;;  %v2886_v34 = vld [vmem:[#allocation20_spill] sm:$0xff] }
 0x5a2   :  { %1325 = vmatpush1.bf16.msra.mxu0 %v2743_v1  ;;  %1907 = vmatpush3.bf16.msra.mxu1 %v2373_v35  ;;  %v2762_v35 = vld [vmem:[#allocation9 + $0x30] ss:$12 sps:$4 sm:$0xff]  }
 0x5a3   :  { %1326 = vmatprep.subr.bf16.mxu0 %v2747_v22  ;;  %1908 = vmatprep.subr.bf16.mxu1 %v2883_v11 }
 0x5a4   :  { %1356 = vmatprep.mubr.bf16.mxu0 %v2884_v21  ;;  %1922 = vmatprep.mubr.msk.bf16.mxu1 %vm2260_vm2, %v2883_v11 }
 0x5a6   :  { %1327 = vmatpush1.bf16.msra.mxu0 %v2754_v8  ;;  %1909 = vmatpush3.bf16.msra.mxu1 %v2390_v41  ;;  %v2774_v41 = vld [vmem:[#allocation9 + $0x64] ss:$12 sps:$4 sm:$0xff]  }
 0x5a7   :  { %1328 = vmatprep.subr.bf16.mxu0 %v2758_v38  ;;  %1910 = vmatprep.subr.bf16.mxu1 %v2883_v11 }
 0x5aa   :  { %1329 = vmatpush1.bf16.msra.mxu0 %v2762_v35  ;;  %1911 = vmatpush3.bf16.msra.mxu1 %v2401_v44 }
 0x5ab   :  { %1330 = vmatprep.subr.bf16.mxu0 %v2766_v4  ;;  %1912 = vmatprep.subr.bf16.mxu1 %v2883_v11 }
 0x5ae   :  { %1331 = vmatpush1.bf16.msra.mxu0 %v2770_v0  ;;  %1913 = vmatpush3.bf16.msra.mxu1 %v2413_v49 }
 0x5af   :  { %1332 = vmatprep.subr.bf16.mxu0 %v2774_v41  ;;  %1914 = vmatprep.subr.bf16.mxu1 %v2883_v11 }
 0x5b2   :  { %1333 = vmatpush1.bf16.msra.mxu0 %v2394_v42  ;;  %1915 = vmatpush3.bf16.msra.mxu1 %v2426_v52 }
 0x5b3   :  { %1334 = vmatprep.subr.bf16.mxu0 %v2397_v43  ;;  %1916 = vmatprep.subr.bf16.mxu1 %v2883_v11 }
 0x5b6   :  { %1335 = vmatpush1.bf16.msra.mxu0 %v2405_v46  ;;  %1917 = vmatpush3.bf16.msra.mxu1 %v2437_v55 }
 0x5b7   :  { %1336 = vmatprep.subr.bf16.mxu0 %v2410_v48  ;;  %1918 = vmatprep.subr.bf16.mxu1 %v2883_v11 }
 0x5ba   :  { %1337 = vmatpush1.bf16.msra.mxu0 %v2420_v50  ;;  %1919 = vmatpush3.bf16.msra.mxu1 %v2444_v57 }
 0x5bb   :  { %1338 = vmatprep.subr.bf16.mxu0 %v2423_v51  ;;  %1920 = vmatprep.subr.bf16.mxu1 %v2883_v11 }
 0x5be   :  { %1339 = vmatpush1.bf16.msra.mxu0 %v2432_v54  ;;  %1921 = vmatpush3.bf16.msra.mxu1 %v2451_v59 }
 0x5bf   :  { %1442 = vmatprep.subr.bf16.mxu0 %v2729_v26  ;;  %1926 = vmatprep.subr.bf16.mxu1 %v2883_v11 }
 0x674   :  { %v1240_v42 = vpop.f32.mrb[36].mxu0  ;;  %v1281_v43 = vpop.f32.mrb[28].mxu1 }
 0x675   :  { %v1290_v44 = vadd.f32 %v1240_v42, %v2518_v58  ;;  %v1242_v46 = vpop.f32.mrb[37].mxu0  ;;  %v1904_v48 = vpop.f32.mrb[29].mxu1  ;;  %v1304_v60 = vadd.f32 %v2545_v2, %v1281_v43 }
 0x676   :  { %v1297_v49 = vadd.f32 %v1242_v46, %v2523_v63  ;;  %v1244_v50 = vpop.f32.mrb[38].mxu0  ;;  %v1284_v51 = vpop.f32.mrb[30].mxu1  ;;  %v2887_v46 = vld [vmem:[#allocation17_spill] sm:$0xff] }
 0x677   :  { %v1663_v52 = vmul.f32 -1.442695, %v1290_v44  ;;  %v1245_v55 = vpop.f32.mrb[39].mxu0  ;;  %v1905_v57 = vpop.f32.mrb[31].mxu1 }
 0x678   :  { %v1664_v54 = vmul.f32 -1.442695, %v1297_v49  ;;  %v1434_v55 = vpop.permute.xlu0 %1433 }
 0x679   :  { %2079 = vpow2.f32 %v1663_v52  ;;  %vm1435_vm0 = vcmp.eq.s32.totalorder %v1434_v55, 1 }
 0x67a   :  { %2081 = vpow2.f32 %v1664_v54 }
 0x683   :  { %v2080_v59 = vpop.eup %2079 }
 0x684   :  { %v1294_v31 = vadd.f32 1.0, %v2080_v59  ;;  %v2082_v19 = vpop.eup %2081 }
 0x685   :  { %v1301_v26 = vadd.f32 1.0, %v2082_v19 }
 0x686   :  { %2083 = vrcp.f32 %v1294_v31 }
 0x690   :  { %v2084_v28 = vpop.eup %2083 }
 0x691   :  { %v1305_v58 = vmul.f32 %v2084_v28, %v1304_v60 }
 0x693   :  { %v1306_v20 = vadd.f32 %v1305_v58, %v2532_v12  ;;  %v2118_v12 = vld [vmem:[#allocation9 + $0x8] ss:$12 sps:$4 sm:$0xff]  }
 0x695   :  { %2085 = vtanh.f32 %v1306_v20  ;;  %v2888_v20 = vld [vmem:[#allocation21_spill] sm:$0xff] }
 0x696   :  { %2087 = vrcp.f32 %v1301_v26 }
 0x69f   :  { %v2086_v63 = vpop.eup %2085 }
 0x6a0   :  { %v1308_v27 = vsub.f32 %v2739_v5, %v2086_v63  ;;  %v2088_v29 = vpop.eup %2087 }
 0x6a2   :  { %v1309_v30 = vmul.f32 %v2088_v29, %v1308_v27 }
 0x6a4   :  { %v1310_v33 = vadd.f32 %v2086_v63, %v1309_v30 }
 0x6a6   :  { %v2800_v37 = vsel %vm1317_vm15, %v1310_v33, %v2739_v5  ;;  %v1319_v40 = vsel %vm1317_vm15, %v1310_v33, 0.0 }
 0x6a7   :  { %v1320_v25 = vpack.c.bf16 %v1319_v40, %v1319_v40  ;;  %v1323_v16 = vpack.c.bf16 %v2800_v37, %v2800_v37 }
 0x6a9   :  { %1321 = vst [vmem:[#allocation10 + $0x14] sm:$0xf] %v1320_v25  ;;  %1357 = vmatmul.mubr.bf16.vlgmr.msra.gmra.mrb[40].mxu0 %v1323_v16  ;;  %1923 = vmatmul.mubr.bf16.vlgmr.msra.gmra.mrb[32].mxu1 %v1323_v16 }
 0x6aa   :  { %1443 = vmatpush1.bf16.msra.mxu0 %v2743_v1  ;;  %1927 = vmatpush3.bf16.msra.mxu1 %v2118_v12 }
 0x6ab   :  { %1444 = vmatprep.subr.bf16.mxu0 %v2747_v22  ;;  %1928 = vmatprep.subr.bf16.mxu1 %v2883_v11 }
 0x6ac   :  { %1474 = vmatprep.mubr.bf16.mxu0 %v2884_v21  ;;  %1942 = vmatprep.mubr.msk.bf16.mxu1 %vm2260_vm2, %v2883_v11  ;;  %v2121_v21 = vld [vmem:[#allocation9 + $0x50] ss:$12 sps:$4 sm:$0xff]  }
 0x6ae   :  { %1445 = vmatpush1.bf16.msra.mxu0 %v2754_v8  ;;  %1929 = vmatpush3.bf16.msra.mxu1 %v2119_v61 }
 0x6af   :  { %1446 = vmatprep.subr.bf16.mxu0 %v2758_v38  ;;  %1930 = vmatprep.subr.bf16.mxu1 %v2883_v11 }
 0x6b2   :  { %1447 = vmatpush1.bf16.msra.mxu0 %v2762_v35  ;;  %1931 = vmatpush3.bf16.msra.mxu1 %v2120_v53 }
 0x6b3   :  { %1448 = vmatprep.subr.bf16.mxu0 %v2766_v4  ;;  %1932 = vmatprep.subr.bf16.mxu1 %v2883_v11 }
 0x6b6   :  { %1449 = vmatpush1.bf16.msra.mxu0 %v2770_v0  ;;  %1933 = vmatpush3.bf16.msra.mxu1 %v2121_v21 }
 0x6b7   :  { %1450 = vmatprep.subr.bf16.mxu0 %v2774_v41  ;;  %1934 = vmatprep.subr.bf16.mxu1 %v2883_v11 }
 0x6ba   :  { %1451 = vmatpush1.bf16.msra.mxu0 %v2122_v36  ;;  %1935 = vmatpush3.bf16.msra.mxu1 %v2123_v56  ;;  %v2889_v56 = vld [vmem:[#allocation18_spill] sm:$0xff] }
 0x6bb   :  { %1452 = vmatprep.subr.bf16.mxu0 %v2124_v62  ;;  %1936 = vmatprep.subr.bf16.mxu1 %v2883_v11 }
 0x6be   :  { %1453 = vmatpush1.bf16.msra.mxu0 %v2125_v6  ;;  %1937 = vmatpush3.bf16.msra.mxu1 %v2126_v9 }
 0x6bf   :  { %1454 = vmatprep.subr.bf16.mxu0 %v2127_v7  ;;  %1938 = vmatprep.subr.bf16.mxu1 %v2883_v11 }
 0x6c2   :  { %1455 = vmatpush1.bf16.msra.mxu0 %v2128_v39  ;;  %1939 = vmatpush3.bf16.msra.mxu1 %v2129_v14  ;;  %v1552_v39 = vpop.permute.xlu1 %1551 }
 0x6c3   :  { %1456 = vmatprep.subr.bf16.mxu0 %v2130_v17  ;;  %1940 = vmatprep.subr.bf16.mxu1 %v2883_v11  ;;  %vm1553_vm1 = vcmp.eq.s32.totalorder %v1552_v39, 1 }
 0x6c6   :  { %1457 = vmatpush1.bf16.msra.mxu0 %v2131_v47  ;;  %1941 = vmatpush3.bf16.msra.mxu1 %v2132_v10 }
 0x77c   :  { %v1358_v23 = vpop.f32.mrb[40].mxu0  ;;  %v1399_v3 = vpop.f32.mrb[32].mxu1 }
 0x77d   :  { %v1408_v13 = vadd.f32 %v1358_v23, %v2885_v24  ;;  %v1360_v5 = vpop.f32.mrb[41].mxu0  ;;  %v1924_v18 = vpop.f32.mrb[33].mxu1  ;;  %v1422_v42 = vadd.f32 %v2545_v2, %v1399_v3 }
 0x77e   :  { %v1415_v15 = vadd.f32 %v1360_v5, %v2886_v34  ;;  %v1362_v1 = vpop.f32.mrb[42].mxu0  ;;  %v1402_v22 = vpop.f32.mrb[34].mxu1 }
 0x77f   :  { %v1666_v8 = vmul.f32 -1.442695, %v1408_v13  ;;  %v1363_v38 = vpop.f32.mrb[43].mxu0  ;;  %v1925_v35 = vpop.f32.mrb[35].mxu1 }
 0x780   :  { %v1667_v4 = vmul.f32 -1.442695, %v1415_v15 }
 0x781   :  { %2089 = vpow2.f32 %v1666_v8 }
 0x782   :  { %2091 = vpow2.f32 %v1667_v4 }
 0x78b   :  { %v2090_v11 = vpop.eup %2089 }
 0x78c   :  { %v1412_v0 = vadd.f32 1.0, %v2090_v11  ;;  %v2092_v41 = vpop.eup %2091 }
 0x78d   :  { %v1419_v49 = vadd.f32 1.0, %v2092_v41 }
 0x78e   :  { %2093 = vrcp.f32 %v1412_v0 }
 0x798   :  { %v2094_v43 = vpop.eup %2093 }
 0x799   :  { %v1423_v44 = vmul.f32 %v2094_v43, %v1422_v42 }
 0x79b   :  { %v1424_v48 = vadd.f32 %v1423_v44, %v2887_v46 }
 0x79d   :  { %2095 = vtanh.f32 %v1424_v48 }
 0x79e   :  { %2097 = vrcp.f32 %v1419_v49 }
 0x7a7   :  { %v2096_v50 = vpop.eup %2095 }
 0x7a8   :  { %v1426_v51 = vsub.f32 %v2800_v37, %v2096_v50  ;;  %v2098_v52 = vpop.eup %2097 }
 0x7aa   :  { %v1427_v57 = vmul.f32 %v2098_v52, %v1426_v51 }
 0x7ac   :  { %v1428_v54 = vadd.f32 %v2096_v50, %v1427_v57 }
 0x7ae   :  { %v1436_v59 = vsel %vm1435_vm0, %v1428_v54, %v2800_v37  ;;  %v1437_v31 = vsel %vm1435_vm0, %v1428_v54, 0.0 }
 0x7af   :  { %v1438_v19 = vpack.c.bf16 %v1437_v31, %v1437_v31  ;;  %v1441_v60 = vpack.c.bf16 %v1436_v59, %v1436_v59 }
 0x7b1   :  { %1439 = vst [vmem:[#allocation10 + $0x18] sm:$0xf] %v1438_v19  ;;  %1475 = vmatmul.mubr.bf16.vlgmr.msra.gmra.mrb[44].mxu0 %v1441_v60  ;;  %1943 = vmatmul.mubr.bf16.vlgmr.msra.gmra.mrb[36].mxu1 %v1441_v60 }
 0x884   :  { %v1476_v28 = vpop.f32.mrb[44].mxu0  ;;  %v1517_v58 = vpop.f32.mrb[36].mxu1 }
 0x885   :  { %v1526_v26 = vadd.f32 %v1476_v28, %v2888_v20  ;;  %v1478_v63 = vpop.f32.mrb[45].mxu0  ;;  %v1944_v27 = vpop.f32.mrb[37].mxu1  ;;  %v1540_v53 = vadd.f32 %v2545_v2, %v1517_v58 }
 0x886   :  { %v1533_v29 = vadd.f32 %v1478_v63, %v2540_v45  ;;  %v1480_v30 = vpop.f32.mrb[46].mxu0  ;;  %v1520_v32 = vpop.f32.mrb[38].mxu1 }
 0x887   :  { %v1669_v33 = vmul.f32 -1.442695, %v1526_v26  ;;  %v1481_v40 = vpop.f32.mrb[47].mxu0  ;;  %v1945_v25 = vpop.f32.mrb[39].mxu1 }
 0x888   :  { %v1670_v37 = vmul.f32 -1.442695, %v1533_v29 }
 0x889   :  { %2099 = vpow2.f32 %v1669_v33 }
 0x88a   :  { %2101 = vpow2.f32 %v1670_v37 }
 0x893   :  { %v2100_v16 = vpop.eup %2099 }
 0x894   :  { %v1530_v12 = vadd.f32 1.0, %v2100_v16  ;;  %v2102_v61 = vpop.eup %2101 }
 0x895   :  { %v1537_v6 = vadd.f32 1.0, %v2102_v61 }
 0x896   :  { %2103 = vrcp.f32 %v1530_v12 }
 0x8a0   :  { %v2104_v21 = vpop.eup %2103 }
 0x8a1   :  { %v1541_v36 = vmul.f32 %v2104_v21, %v1540_v53 }
 0x8a3   :  { %v1542_v62 = vadd.f32 %v1541_v36, %v2889_v56 }
 0x8a5   :  { %2105 = vtanh.f32 %v1542_v62 }
 0x8a6   :  { %2107 = vrcp.f32 %v1537_v6 }
 0x8af   :  { %v2106_v45 = vpop.eup %2105 }
 0x8b0   :  { %v1544_v9 = vsub.f32 %v1436_v59, %v2106_v45  ;;  %v2108_v7 = vpop.eup %2107 }
 0x8b2   :  { %v1545_v14 = vmul.f32 %v2108_v7, %v1544_v9 }
 0x8b4   :  { %v1546_v17 = vadd.f32 %v2106_v45, %v1545_v14 }
 0x8b6   :  { %v1555_v2 = vsel %vm1553_vm1, %v1546_v17, 0.0  ;;  %v1554_v47 = vsel %vm1553_vm1, %v1546_v17, %v1436_v59 }
 0x8b7   :  { %v1556_v10 = vpack.c.bf16 %v1555_v2, %v1555_v2  ;;  %1562 = vst [vmem:[#allocation11] sm:$0xff] %v1554_v47 }
 0x8b8   :  { %2210 = shalt.err (!%p2207_p0)
}
 0x8b9   :  { %s2211_s26 = scalar_lea.hbm %s2873_s7, 128 }
 0x8ba   :  { %p2212_p1 = scmp.ne.s32.totalorder %s2873_s7, %s2211_s26  ;;  %p2215_p2 = scmp.lt.u32.totalorder %s2211_s26, %s2873_s7 }
 0x8bc   :  { %p2217_p3 = pnand %p2215_p2, %p2212_p1 }
 0x8be   :  { %2220 = shalt.err (!%p2217_p3)
}
 0x8bf   :  { %1584 = dma.vmem_to_hbm [thread:$0]  %s1582_s19, 128, %s2873_s7, [#allocation12]   ;;  %1557 = vst [vmem:[#allocation10 + $0x1c] sm:$0xf] %v1556_v10 }
 0x8c0   :  { %s2221_s10 = scalar_lea.vmem %s2832_s21, 512  ;;  %p2226_p5 = scmp.lt.s32.totalorder %s2832_s21, %s2832_s21 }
 0x8c1   :  { %p2222_p4 = scmp.ne.s32.totalorder %s2832_s21, %s2221_s10  ;;  %p2227_p6 = scmp.lt.s32.totalorder %s2221_s10, %s2221_s10 }
 0x8c3   :  { %p2228_p7 = por %p2227_p6, %p2226_p5 }
 0x8c5   :  { %p2229_p8 = pnand %p2228_p7, %p2222_p4 }
 0x8c7   :  { %2232 = shalt.err (!%p2229_p8)
}
 0x8c8   :  { %s2233_s15 = scalar_lea.hbm %s2872_s6, 512 }
 0x8c9   :  { %p2234_p9 = scmp.ne.s32.totalorder %s2872_s6, %s2233_s15  ;;  %p2237_p10 = scmp.lt.u32.totalorder %s2233_s15, %s2872_s6 }
 0x8cb   :  { %p2239_p11 = pnand %p2237_p10, %p2234_p9 }
 0x8cd   :  { %2242 = shalt.err (!%p2239_p11)
}
 0x8ce   :  { %1574 = dma.vmem_to_hbm [thread:$0]  %s2832_s21, 512, %s2872_s6, [#allocation6], %s2255_s2, %s2255_s2, %s2256_s25  }
 0x8cf   :  { %2247 = dma.done.wait [#allocation6], 512  }
 0x8d0   :  { %2248 = vsyncadd [#allocation6], 4294966784 }
 0x8d1   :  { %2249 = dma.done.wait [#allocation12], 128  }
 0x8d2   :  { %2250 = vsyncadd [#allocation12], 4294967168 }
 0x8d3   :  { %1591 = vsyncpa [#allocation5], 1 }
 0x8d4   :  { %1592 = vsyncpa [#allocation8], 1 }
 0x8d5   :  { %1593 = vsyncpa [#allocation6], 1 }
 0x8d6   :  { %1594 = vsyncpa [#allocation12], 1 }

</bundles_post_ra>
